<compile_context>
chip_gen: v7x
topology: tpu7x:2x2x1
jax: 0.10.0
libtpu: 0.0.40
codegen_flags: <defaults>
</compile_context>

<pallas_src>
import functools

import jax
import jax.numpy as jnp
from jax import lax
from jax.experimental import pallas as pl
from jax.experimental.pallas import tpu as pltpu


# ---------------------------------------------------------------------------
# VPU shift-and-accumulate kernel (small filters)
# ---------------------------------------------------------------------------
def _linconv2d_vpu_kernel(w_ref, x_ref, o_ref, xr_ref, *, k, pad, strip):
    # w_ref : (k*k,)        f32 in SMEM (filter taps, scalar reads)
    # x_ref : (Bt, H, W)    VMEM (chunk of unpadded images)
    # o_ref : (Bt, H, W)    VMEM
    # xr_ref: (k, Bt, H, W) VMEM scratch (bank of H-rolled copies)
    Bt, H, W = o_ref.shape
    x = x_ref[...].astype(xr_ref.dtype)

    # Bank of H-rolled copies: xr[di][b, i, :] == x[b, (i + di - pad) % H, :].
    # k sublane rolls total (XLU), done once per block.
    for di in range(k):
        sh = (pad - di) % H
        xr_ref[di] = pltpu.roll(x, sh, 1) if sh else x

    n_strips = H // strip

    # Strip loop: the f32 accumulator for one strip stays register-resident
    # across all k*k taps and is stored exactly once.
    @pl.loop(0, n_strips)
    def _(s):
        r0 = pl.multiple_of(s * strip, strip)
        acc = jnp.zeros((Bt, strip, W), jnp.float32)
        for dj in range(k):
            # Column sum: pure VPU multiply-adds, no rolls.
            col = jnp.zeros((Bt, strip, W), jnp.float32)
            for di in range(k):
                col = col + w_ref[di * k + dj] * xr_ref[di, :, pl.ds(r0, strip), :]
            # One lane roll per filter column (k lane rolls per strip).
            sw = (pad - dj) % W
            acc = acc + (pltpu.roll(col, sw, 2) if sw else col)
        o_ref[:, pl.ds(r0, strip), :] = acc.astype(o_ref.dtype)


# ---------------------------------------------------------------------------
# MXU circulant-matmul kernel (large filters, e.g. filter_size=65)
# ---------------------------------------------------------------------------
def _linconv2d_mxu_kernel(x_ref, c_ref, o_ref, *, k, pad):
    # x_ref: (Bt, H, W) images, c_ref: (k, W, W) circulant bank, o_ref: (Bt, H, W)
    Bt, H, W = o_ref.shape
    for b in range(Bt):
        x = x_ref[b].astype(jnp.float32)           # (H, W)
        acc = jnp.zeros((H, W), jnp.float32)
        for d in range(k):
            sh = (pad - d) % H
            xr = pltpu.roll(x, sh, 0) if sh else x  # static sublane roll
            acc = acc + jnp.dot(xr, c_ref[d].astype(jnp.float32),
                                preferred_element_type=jnp.float32)
        o_ref[b] = acc.astype(o_ref.dtype)
    # TODO(synk): for the full 65x65 / 256x256 config on v7x, stream the
    # circulant bank per filter row via a grid reduction axis (bf16 bank)
    # instead of keeping the whole (k, W, W) bank resident in VMEM.


# ---------------------------------------------------------------------------
# Sizing helpers (generation aware)
# ---------------------------------------------------------------------------
def _vmem_limit_bytes():
    cap = 64 * 1024 * 1024                    # conservative default (v7x VMEM)
    try:
        cap = int(pltpu.get_tpu_info().vmem_capacity_bytes)
    except Exception:
        pass
    # Request ~3/4 of physical VMEM (<= ~48 MiB on v7x, ~96 MiB on v5e/v6e),
    # leaving headroom for compiler temporaries.
    return int(min(cap * 3 // 4, 96 * 1024 * 1024))


def _choose_bt(B, H, W, itemsize, k, budget_bytes, mode):
    """Images per grid step: fill the budget, but keep >=4 grid steps when the
    batch allows (>=2 steps per TensorCore on v7x megacore)."""
    if mode == "vpu":
        # double-buffered in+out blocks + k rolled copies + strip temporaries
        per_img = 4 * itemsize * H * W + (k + 4) * H * W * 4
    else:
        per_img = 4 * itemsize * H * W + 6 * H * W * 4
    cap = max(1, int(budget_bytes) // per_img)
    target_steps = min(B, 4) if B > 0 else 1
    return max(1, min(cap, -(-B // target_steps)))


def _choose_strip(H, bt, W):
    """Rows per strip so the f32 strip accumulator is a handful of vregs."""
    if H % 8 != 0:
        return H
    acc_budget = 16 * 1024                     # bytes for the f32 accumulator
    s = (acc_budget // (bt * W * 4)) // 8 * 8
    s = max(8, min(s if s > 0 else 8, H))
    while H % s:
        s -= 8
    return s


def _circulant_bank(w_kk, W, pad):
    """C[d, m, j] = w[d, (m-j+pad) % W] if (m-j+pad) % W < k else 0, so that
    roll_H(x, pad-d) @ C[d] is the contribution of filter row d."""
    k = w_kk.shape[0]
    m = jnp.arange(W)[:, None]
    j = jnp.arange(W)[None, :]
    idx = (m - j + pad) % W                    # (W, W)
    mask = idx < k
    return jnp.where(mask[None], w_kk[:, jnp.minimum(idx, k - 1)], 0.0)  # (k,W,W)


# ---------------------------------------------------------------------------
# Wrapper
# ---------------------------------------------------------------------------
def lin_conv2d(z, weight, *, mode="auto", bt=None):
    """z: [B, 1, H, W] (NCHW), weight: [1, 1, k, k] (OIHW) -> [B, 1, H, W]."""
    B, C, H, W = z.shape
    assert C == 1, "LinConv2D is single-channel"
    k = weight.shape[-1]
    assert weight.shape == (1, 1, k, k) and k % 2 == 1
    pad = (k - 1) // 2
    # PyTorch circular padding requires pad < spatial size; the roll/circulant
    # formulations match it in that regime.
    assert pad < H and pad < W

    if mode == "auto":
        mode = "mxu" if (k >= 9 and k <= min(H, W)) else "vpu"
    assert mode in ("vpu", "mxu")
    if mode == "mxu":
        assert k <= W, "circulant path needs filter_size <= im_size"

    x = z[:, 0]                                              # [B, H, W]
    itemsize = jnp.dtype(z.dtype).itemsize
    vmem_limit = _vmem_limit_bytes()

    if bt is None:
        bt = _choose_bt(B, H, W, itemsize, k, vmem_limit // 2, mode)
    nb = pl.cdiv(B, bt)
    Bp = nb * bt
    if Bp != B:                        # pad the batch instead of requiring B % bt == 0
        x = jnp.pad(x, ((0, Bp - B), (0, 0), (0, 0)))

    cparams = pltpu.CompilerParams(
        dimension_semantics=("parallel",),
        vmem_limit_bytes=vmem_limit,
    )

    if mode == "vpu":
        w_flat = weight[0, 0].reshape(-1).astype(jnp.float32)        # (k*k,)
        roll_dtype = z.dtype if z.dtype == jnp.bfloat16 else jnp.float32
        strip = _choose_strip(H, bt, W)
        out = pl.pallas_call(
            functools.partial(_linconv2d_vpu_kernel, k=k, pad=pad, strip=strip),
            out_shape=jax.ShapeDtypeStruct((Bp, H, W), z.dtype),
            grid=(nb,),
            in_specs=[
                pl.BlockSpec(memory_space=pltpu.MemorySpace.SMEM),   # filter taps
                pl.BlockSpec((bt, H, W), lambda b: (b, 0, 0)),       # image chunk
            ],
            out_specs=pl.BlockSpec((bt, H, W), lambda b: (b, 0, 0)),
            scratch_shapes=[pltpu.VMEM((k, bt, H, W), roll_dtype)],
            compiler_params=cparams,
        )(w_flat, x)
    else:
        bank = _circulant_bank(weight[0, 0].astype(jnp.float32), W, pad)
        out = pl.pallas_call(
            functools.partial(_linconv2d_mxu_kernel, k=k, pad=pad),
            out_shape=jax.ShapeDtypeStruct((Bp, H, W), z.dtype),
            grid=(nb,),
            in_specs=[
                pl.BlockSpec((bt, H, W), lambda b: (b, 0, 0)),       # image chunk
                pl.BlockSpec((k, W, W), lambda b: (0, 0, 0)),        # resident bank
            ],
            out_specs=pl.BlockSpec((bt, H, W), lambda b: (b, 0, 0)),
            compiler_params=cparams,
        )(x, bank)

    return out[:B, None]                                             # back to NCHW


# ---------------------------------------------------------------------------
# Demo / self-test
# ---------------------------------------------------------------------------
if __name__ == "__main__":
    key = jax.random.PRNGKey(0)
    kx, kw1, kw2 = jax.random.split(key, 3)

    B, C, im_size = 5, 1, 128           # B=5 exercises the padded-batch path
    z = jax.random.normal(kx, (B, C, im_size, im_size), dtype=jnp.float32)

    def reference(z, w):
        p = (w.shape[-1] - 1) // 2
        zp = jnp.pad(z, ((0, 0), (0, 0), (p, p), (p, p)), mode="wrap")
        return lax.conv_general_dilated(
            zp, w, window_strides=(1, 1), padding="VALID",
            dimension_numbers=("NCHW", "OIHW", "NCHW"),
            precision=lax.Precision.HIGHEST)

    def make_weight(kw, filter_size):
        # nn.Conv2d default init: U(-1/sqrt(fan_in), +1/sqrt(fan_in)), bias=False
        bound = 1.0 / float(filter_size)
        return jax.random.uniform(kw, (1, 1, filter_size, filter_size),
                                  dtype=jnp.float32, minval=-bound, maxval=bound)

    # Small filter -> VPU column-sum path (exact f32 accumulation).
    w5 = make_weight(kw1, 5)
    y = jax.block_until_ready(lin_conv2d(z, w5, mode="vpu"))
    y_ref = reference(z, w5)
    assert y.shape == z.shape and y.dtype == z.dtype
    assert jnp.allclose(y, y_ref, atol=1e-4, rtol=1e-4), \
        float(jnp.max(jnp.abs(y - y_ref)))

    # Larger filter -> MXU circulant path (module default is 65x65; f32 MXU
    # matmuls may use bf16 passes at default precision, hence looser tolerance).
    w13 = make_weight(kw2, 13)
    y = jax.block_until_ready(lin_conv2d(z, w13, mode="mxu"))
    y_ref = reference(z, w13)
    assert y.shape == z.shape and y.dtype == z.dtype
    assert jnp.allclose(y, y_ref, atol=3e-2, rtol=3e-2), \
        float(jnp.max(jnp.abs(y - y_ref)))

    print("KERNEL_OK")
</pallas_src>

<mosaic_0001>
module attributes {stable_mosaic.version = 11 : i64} {
  func.func @_linconv2d_vpu_kernel(%arg0: i32, %arg1: memref<25xf32, #tpu.memory_space<smem>>, %arg2: memref<2x128x128xf32, #tpu.memory_space<vmem>>, %arg3: memref<2x128x128xf32, #tpu.memory_space<vmem>>, %arg4: memref<5x2x128x128xf32, #tpu.memory_space<vmem>>) attributes {dimension_semantics = [#tpu.dimension_semantics<parallel>], iteration_bounds = array<i64: 3>, scalar_prefetch = 0 : i64, scratch_operands = 1 : i64, tpu.core_type = #tpu.core_type<tc>, window_params = [{transform_indices = @transform_0, window_bounds = array<i64: 25>}, {transform_indices = @transform_1, window_bounds = array<i64: 2, 128, 128>}, {transform_indices = @transform_2, window_bounds = array<i64: 2, 128, 128>}]} {
    %c0 = arith.constant 0 : index
    %c0_0 = arith.constant 0 : index
    %c0_1 = arith.constant 0 : index
    %0 = vector.load %arg2[%c0, %c0_0, %c0_1] : memref<2x128x128xf32, #tpu.memory_space<vmem>>, vector<2x128x128xf32>
    %c2_i32 = arith.constant 2 : i32
    %1 = tpu.dynamic_rotate %0 by %c2_i32 dim 1 : vector<2x128x128xf32>, i32 -> vector<2x128x128xf32>
    %c0_2 = arith.constant 0 : index
    %c0_3 = arith.constant 0 : index
    %c0_4 = arith.constant 0 : index
    %c0_5 = arith.constant 0 : index
    %2 = vector.load %arg4[%c0_2, %c0_3, %c0_4, %c0_5] : memref<5x2x128x128xf32, #tpu.memory_space<vmem>>, vector<1x2x128x128xf32>
    %3 = vector.shape_cast %2 : vector<1x2x128x128xf32> to vector<2x128x128xf32>
    %4 = vector.shape_cast %1 : vector<2x128x128xf32> to vector<1x2x128x128xf32>
    tpu.vector_store %arg4[%c0_2, %c0_3, %c0_4, %c0_5], %4 {strides = array<i32>} : memref<5x2x128x128xf32, #tpu.memory_space<vmem>>, vector<1x2x128x128xf32>,
    %c1_i32 = arith.constant 1 : i32
    %5 = tpu.dynamic_rotate %0 by %c1_i32 dim 1 : vector<2x128x128xf32>, i32 -> vector<2x128x128xf32>
    %c1 = arith.constant 1 : index
    %c0_6 = arith.constant 0 : index
    %c0_7 = arith.constant 0 : index
    %c0_8 = arith.constant 0 : index
    %6 = vector.load %arg4[%c1, %c0_6, %c0_7, %c0_8] : memref<5x2x128x128xf32, #tpu.memory_space<vmem>>, vector<1x2x128x128xf32>
    %7 = vector.shape_cast %6 : vector<1x2x128x128xf32> to vector<2x128x128xf32>
    %8 = vector.shape_cast %5 : vector<2x128x128xf32> to vector<1x2x128x128xf32>
    tpu.vector_store %arg4[%c1, %c0_6, %c0_7, %c0_8], %8 {strides = array<i32>} : memref<5x2x128x128xf32, #tpu.memory_space<vmem>>, vector<1x2x128x128xf32>,
    %c2 = arith.constant 2 : index
    %c0_9 = arith.constant 0 : index
    %c0_10 = arith.constant 0 : index
    %c0_11 = arith.constant 0 : index
    %9 = vector.load %arg4[%c2, %c0_9, %c0_10, %c0_11] : memref<5x2x128x128xf32, #tpu.memory_space<vmem>>, vector<1x2x128x128xf32>
    %10 = vector.shape_cast %9 : vector<1x2x128x128xf32> to vector<2x128x128xf32>
    %11 = vector.shape_cast %0 : vector<2x128x128xf32> to vector<1x2x128x128xf32>
    tpu.vector_store %arg4[%c2, %c0_9, %c0_10, %c0_11], %11 {strides = array<i32>} : memref<5x2x128x128xf32, #tpu.memory_space<vmem>>, vector<1x2x128x128xf32>,
    %c127_i32 = arith.constant 127 : i32
    %12 = tpu.dynamic_rotate %0 by %c127_i32 dim 1 : vector<2x128x128xf32>, i32 -> vector<2x128x128xf32>
    %c3 = arith.constant 3 : index
    %c0_12 = arith.constant 0 : index
    %c0_13 = arith.constant 0 : index
    %c0_14 = arith.constant 0 : index
    %13 = vector.load %arg4[%c3, %c0_12, %c0_13, %c0_14] : memref<5x2x128x128xf32, #tpu.memory_space<vmem>>, vector<1x2x128x128xf32>
    %14 = vector.shape_cast %13 : vector<1x2x128x128xf32> to vector<2x128x128xf32>
    %15 = vector.shape_cast %12 : vector<2x128x128xf32> to vector<1x2x128x128xf32>
    tpu.vector_store %arg4[%c3, %c0_12, %c0_13, %c0_14], %15 {strides = array<i32>} : memref<5x2x128x128xf32, #tpu.memory_space<vmem>>, vector<1x2x128x128xf32>,
    %c126_i32 = arith.constant 126 : i32
    %16 = tpu.dynamic_rotate %0 by %c126_i32 dim 1 : vector<2x128x128xf32>, i32 -> vector<2x128x128xf32>
    %c4 = arith.constant 4 : index
    %c0_15 = arith.constant 0 : index
    %c0_16 = arith.constant 0 : index
    %c0_17 = arith.constant 0 : index
    %17 = vector.load %arg4[%c4, %c0_15, %c0_16, %c0_17] : memref<5x2x128x128xf32, #tpu.memory_space<vmem>>, vector<1x2x128x128xf32>
    %18 = vector.shape_cast %17 : vector<1x2x128x128xf32> to vector<2x128x128xf32>
    %19 = vector.shape_cast %16 : vector<2x128x128xf32> to vector<1x2x128x128xf32>
    tpu.vector_store %arg4[%c4, %c0_15, %c0_16, %c0_17], %19 {strides = array<i32>} : memref<5x2x128x128xf32, #tpu.memory_space<vmem>>, vector<1x2x128x128xf32>,
    %c0_i32 = arith.constant 0 : i32
    %c8_i32 = arith.constant 8 : i32
    %20 = arith.addi %c0_i32, %c8_i32 : i32
    %c1_i32_18 = arith.constant 1 : i32
    scf.for %arg5 = %c0_i32 to %20 step %c1_i32_18  : i32 {
      %c1_i32_20 = arith.constant 1 : i32
      %21 = arith.muli %arg5, %c1_i32_20 : i32
      %c0_i32_21 = arith.constant 0 : i32
      %22 = arith.addi %c0_i32_21, %21 : i32
      %c16_i32 = arith.constant 16 : i32
      %23 = arith.muli %22, %c16_i32 : i32
      %24 = tpu.assume_multiple %23, 16 : i32
      %cst = arith.constant 0.000000e+00 : f32
      %25 = vector.broadcast %cst : f32 to vector<2x16x128xf32>
      %cst_22 = arith.constant 0.000000e+00 : f32
      %26 = vector.broadcast %cst_22 : f32 to vector<2x16x128xf32>
      %c0_23 = arith.constant 0 : index
      %27 = memref.load %arg1[%c0_23] : memref<25xf32, #tpu.memory_space<smem>>
      %c0_24 = arith.constant 0 : index
      %c0_25 = arith.constant 0 : index
      %28 = arith.index_cast %24 : i32 to index
      %c0_26 = arith.constant 0 : index
      %29 = vector.load %arg4[%c0_24, %c0_25, %28, %c0_26] : memref<5x2x128x128xf32, #tpu.memory_space<vmem>>, vector<1x2x16x128xf32>
      %30 = vector.shape_cast %29 : vector<1x2x16x128xf32> to vector<2x16x128xf32>
      %31 = vector.broadcast %27 : f32 to vector<2x16x128xf32>
      %32 = arith.mulf %31, %30 : vector<2x16x128xf32>
      %33 = arith.addf %26, %32 : vector<2x16x128xf32>
      %c5 = arith.constant 5 : index
      %34 = memref.load %arg1[%c5] : memref<25xf32, #tpu.memory_space<smem>>
      %c1_27 = arith.constant 1 : index
      %c0_28 = arith.constant 0 : index
      %35 = arith.index_cast %24 : i32 to index
      %c0_29 = arith.constant 0 : index
      %36 = vector.load %arg4[%c1_27, %c0_28, %35, %c0_29] : memref<5x2x128x128xf32, #tpu.memory_space<vmem>>, vector<1x2x16x128xf32>
      %37 = vector.shape_cast %36 : vector<1x2x16x128xf32> to vector<2x16x128xf32>
      %38 = vector.broadcast %34 : f32 to vector<2x16x128xf32>
      %39 = arith.mulf %38, %37 : vector<2x16x128xf32>
      %40 = arith.addf %33, %39 : vector<2x16x128xf32>
      %c10 = arith.constant 10 : index
      %41 = memref.load %arg1[%c10] : memref<25xf32, #tpu.memory_space<smem>>
      %c2_30 = arith.constant 2 : index
      %c0_31 = arith.constant 0 : index
      %42 = arith.index_cast %24 : i32 to index
      %c0_32 = arith.constant 0 : index
      %43 = vector.load %arg4[%c2_30, %c0_31, %42, %c0_32] : memref<5x2x128x128xf32, #tpu.memory_space<vmem>>, vector<1x2x16x128xf32>
      %44 = vector.shape_cast %43 : vector<1x2x16x128xf32> to vector<2x16x128xf32>
      %45 = vector.broadcast %41 : f32 to vector<2x16x128xf32>
      %46 = arith.mulf %45, %44 : vector<2x16x128xf32>
      %47 = arith.addf %40, %46 : vector<2x16x128xf32>
      %c15 = arith.constant 15 : index
      %48 = memref.load %arg1[%c15] : memref<25xf32, #tpu.memory_space<smem>>
      %c3_33 = arith.constant 3 : index
      %c0_34 = arith.constant 0 : index
      %49 = arith.index_cast %24 : i32 to index
      %c0_35 = arith.constant 0 : index
      %50 = vector.load %arg4[%c3_33, %c0_34, %49, %c0_35] : memref<5x2x128x128xf32, #tpu.memory_space<vmem>>, vector<1x2x16x128xf32>
      %51 = vector.shape_cast %50 : vector<1x2x16x128xf32> to vector<2x16x128xf32>
      %52 = vector.broadcast %48 : f32 to vector<2x16x128xf32>
      %53 = arith.mulf %52, %51 : vector<2x16x128xf32>
      %54 = arith.addf %47, %53 : vector<2x16x128xf32>
      %c20 = arith.constant 20 : index
      %55 = memref.load %arg1[%c20] : memref<25xf32, #tpu.memory_space<smem>>
      %c4_36 = arith.constant 4 : index
      %c0_37 = arith.constant 0 : index
      %56 = arith.index_cast %24 : i32 to index
      %c0_38 = arith.constant 0 : index
      %57 = vector.load %arg4[%c4_36, %c0_37, %56, %c0_38] : memref<5x2x128x128xf32, #tpu.memory_space<vmem>>, vector<1x2x16x128xf32>
      %58 = vector.shape_cast %57 : vector<1x2x16x128xf32> to vector<2x16x128xf32>
      %59 = vector.broadcast %55 : f32 to vector<2x16x128xf32>
      %60 = arith.mulf %59, %58 : vector<2x16x128xf32>
      %61 = arith.addf %54, %60 : vector<2x16x128xf32>
      %c2_i32_39 = arith.constant 2 : i32
      %62 = tpu.dynamic_rotate %61 by %c2_i32_39 dim 2 : vector<2x16x128xf32>, i32 -> vector<2x16x128xf32>
      %63 = arith.addf %25, %62 : vector<2x16x128xf32>
      %cst_40 = arith.constant 0.000000e+00 : f32
      %64 = vector.broadcast %cst_40 : f32 to vector<2x16x128xf32>
      %c1_41 = arith.constant 1 : index
      %65 = memref.load %arg1[%c1_41] : memref<25xf32, #tpu.memory_space<smem>>
      %c0_42 = arith.constant 0 : index
      %c0_43 = arith.constant 0 : index
      %66 = arith.index_cast %24 : i32 to index
      %c0_44 = arith.constant 0 : index
      %67 = vector.load %arg4[%c0_42, %c0_43, %66, %c0_44] : memref<5x2x128x128xf32, #tpu.memory_space<vmem>>, vector<1x2x16x128xf32>
      %68 = vector.shape_cast %67 : vector<1x2x16x128xf32> to vector<2x16x128xf32>
      %69 = vector.broadcast %65 : f32 to vector<2x16x128xf32>
      %70 = arith.mulf %69, %68 : vector<2x16x128xf32>
      %71 = arith.addf %64, %70 : vector<2x16x128xf32>
      %c6 = arith.constant 6 : index
      %72 = memref.load %arg1[%c6] : memref<25xf32, #tpu.memory_space<smem>>
      %c1_45 = arith.constant 1 : index
      %c0_46 = arith.constant 0 : index
      %73 = arith.index_cast %24 : i32 to index
      %c0_47 = arith.constant 0 : index
      %74 = vector.load %arg4[%c1_45, %c0_46, %73, %c0_47] : memref<5x2x128x128xf32, #tpu.memory_space<vmem>>, vector<1x2x16x128xf32>
      %75 = vector.shape_cast %74 : vector<1x2x16x128xf32> to vector<2x16x128xf32>
      %76 = vector.broadcast %72 : f32 to vector<2x16x128xf32>
      %77 = arith.mulf %76, %75 : vector<2x16x128xf32>
      %78 = arith.addf %71, %77 : vector<2x16x128xf32>
      %c11 = arith.constant 11 : index
      %79 = memref.load %arg1[%c11] : memref<25xf32, #tpu.memory_space<smem>>
      %c2_48 = arith.constant 2 : index
      %c0_49 = arith.constant 0 : index
      %80 = arith.index_cast %24 : i32 to index
      %c0_50 = arith.constant 0 : index
      %81 = vector.load %arg4[%c2_48, %c0_49, %80, %c0_50] : memref<5x2x128x128xf32, #tpu.memory_space<vmem>>, vector<1x2x16x128xf32>
      %82 = vector.shape_cast %81 : vector<1x2x16x128xf32> to vector<2x16x128xf32>
      %83 = vector.broadcast %79 : f32 to vector<2x16x128xf32>
      %84 = arith.mulf %83, %82 : vector<2x16x128xf32>
      %85 = arith.addf %78, %84 : vector<2x16x128xf32>
      %c16 = arith.constant 16 : index
      %86 = memref.load %arg1[%c16] : memref<25xf32, #tpu.memory_space<smem>>
      %c3_51 = arith.constant 3 : index
      %c0_52 = arith.constant 0 : index
      %87 = arith.index_cast %24 : i32 to index
      %c0_53 = arith.constant 0 : index
      %88 = vector.load %arg4[%c3_51, %c0_52, %87, %c0_53] : memref<5x2x128x128xf32, #tpu.memory_space<vmem>>, vector<1x2x16x128xf32>
      %89 = vector.shape_cast %88 : vector<1x2x16x128xf32> to vector<2x16x128xf32>
      %90 = vector.broadcast %86 : f32 to vector<2x16x128xf32>
      %91 = arith.mulf %90, %89 : vector<2x16x128xf32>
      %92 = arith.addf %85, %91 : vector<2x16x128xf32>
      %c21 = arith.constant 21 : index
      %93 = memref.load %arg1[%c21] : memref<25xf32, #tpu.memory_space<smem>>
      %c4_54 = arith.constant 4 : index
      %c0_55 = arith.constant 0 : index
      %94 = arith.index_cast %24 : i32 to index
      %c0_56 = arith.constant 0 : index
      %95 = vector.load %arg4[%c4_54, %c0_55, %94, %c0_56] : memref<5x2x128x128xf32, #tpu.memory_space<vmem>>, vector<1x2x16x128xf32>
      %96 = vector.shape_cast %95 : vector<1x2x16x128xf32> to vector<2x16x128xf32>
      %97 = vector.broadcast %93 : f32 to vector<2x16x128xf32>
      %98 = arith.mulf %97, %96 : vector<2x16x128xf32>
      %99 = arith.addf %92, %98 : vector<2x16x128xf32>
      %c1_i32_57 = arith.constant 1 : i32
      %100 = tpu.dynamic_rotate %99 by %c1_i32_57 dim 2 : vector<2x16x128xf32>, i32 -> vector<2x16x128xf32>
      %101 = arith.addf %63, %100 : vector<2x16x128xf32>
      %cst_58 = arith.constant 0.000000e+00 : f32
      %102 = vector.broadcast %cst_58 : f32 to vector<2x16x128xf32>
      %c2_59 = arith.constant 2 : index
      %103 = memref.load %arg1[%c2_59] : memref<25xf32, #tpu.memory_space<smem>>
      %c0_60 = arith.constant 0 : index
      %c0_61 = arith.constant 0 : index
      %104 = arith.index_cast %24 : i32 to index
      %c0_62 = arith.constant 0 : index
      %105 = vector.load %arg4[%c0_60, %c0_61, %104, %c0_62] : memref<5x2x128x128xf32, #tpu.memory_space<vmem>>, vector<1x2x16x128xf32>
      %106 = vector.shape_cast %105 : vector<1x2x16x128xf32> to vector<2x16x128xf32>
      %107 = vector.broadcast %103 : f32 to vector<2x16x128xf32>
      %108 = arith.mulf %107, %106 : vector<2x16x128xf32>
      %109 = arith.addf %102, %108 : vector<2x16x128xf32>
      %c7 = arith.constant 7 : index
      %110 = memref.load %arg1[%c7] : memref<25xf32, #tpu.memory_space<smem>>
      %c1_63 = arith.constant 1 : index
      %c0_64 = arith.constant 0 : index
      %111 = arith.index_cast %24 : i32 to index
      %c0_65 = arith.constant 0 : index
      %112 = vector.load %arg4[%c1_63, %c0_64, %111, %c0_65] : memref<5x2x128x128xf32, #tpu.memory_space<vmem>>, vector<1x2x16x128xf32>
      %113 = vector.shape_cast %112 : vector<1x2x16x128xf32> to vector<2x16x128xf32>
      %114 = vector.broadcast %110 : f32 to vector<2x16x128xf32>
      %115 = arith.mulf %114, %113 : vector<2x16x128xf32>
      %116 = arith.addf %109, %115 : vector<2x16x128xf32>
      %c12 = arith.constant 12 : index
      %117 = memref.load %arg1[%c12] : memref<25xf32, #tpu.memory_space<smem>>
      %c2_66 = arith.constant 2 : index
      %c0_67 = arith.constant 0 : index
      %118 = arith.index_cast %24 : i32 to index
      %c0_68 = arith.constant 0 : index
      %119 = vector.load %arg4[%c2_66, %c0_67, %118, %c0_68] : memref<5x2x128x128xf32, #tpu.memory_space<vmem>>, vector<1x2x16x128xf32>
      %120 = vector.shape_cast %119 : vector<1x2x16x128xf32> to vector<2x16x128xf32>
      %121 = vector.broadcast %117 : f32 to vector<2x16x128xf32>
      %122 = arith.mulf %121, %120 : vector<2x16x128xf32>
      %123 = arith.addf %116, %122 : vector<2x16x128xf32>
      %c17 = arith.constant 17 : index
      %124 = memref.load %arg1[%c17] : memref<25xf32, #tpu.memory_space<smem>>
      %c3_69 = arith.constant 3 : index
      %c0_70 = arith.constant 0 : index
      %125 = arith.index_cast %24 : i32 to index
      %c0_71 = arith.constant 0 : index
      %126 = vector.load %arg4[%c3_69, %c0_70, %125, %c0_71] : memref<5x2x128x128xf32, #tpu.memory_space<vmem>>, vector<1x2x16x128xf32>
      %127 = vector.shape_cast %126 : vector<1x2x16x128xf32> to vector<2x16x128xf32>
      %128 = vector.broadcast %124 : f32 to vector<2x16x128xf32>
      %129 = arith.mulf %128, %127 : vector<2x16x128xf32>
      %130 = arith.addf %123, %129 : vector<2x16x128xf32>
      %c22 = arith.constant 22 : index
      %131 = memref.load %arg1[%c22] : memref<25xf32, #tpu.memory_space<smem>>
      %c4_72 = arith.constant 4 : index
      %c0_73 = arith.constant 0 : index
      %132 = arith.index_cast %24 : i32 to index
      %c0_74 = arith.constant 0 : index
      %133 = vector.load %arg4[%c4_72, %c0_73, %132, %c0_74] : memref<5x2x128x128xf32, #tpu.memory_space<vmem>>, vector<1x2x16x128xf32>
      %134 = vector.shape_cast %133 : vector<1x2x16x128xf32> to vector<2x16x128xf32>
      %135 = vector.broadcast %131 : f32 to vector<2x16x128xf32>
      %136 = arith.mulf %135, %134 : vector<2x16x128xf32>
      %137 = arith.addf %130, %136 : vector<2x16x128xf32>
      %138 = arith.addf %101, %137 : vector<2x16x128xf32>
      %cst_75 = arith.constant 0.000000e+00 : f32
      %139 = vector.broadcast %cst_75 : f32 to vector<2x16x128xf32>
      %c3_76 = arith.constant 3 : index
      %140 = memref.load %arg1[%c3_76] : memref<25xf32, #tpu.memory_space<smem>>
      %c0_77 = arith.constant 0 : index
      %c0_78 = arith.constant 0 : index
      %141 = arith.index_cast %24 : i32 to index
      %c0_79 = arith.constant 0 : index
      %142 = vector.load %arg4[%c0_77, %c0_78, %141, %c0_79] : memref<5x2x128x128xf32, #tpu.memory_space<vmem>>, vector<1x2x16x128xf32>
      %143 = vector.shape_cast %142 : vector<1x2x16x128xf32> to vector<2x16x128xf32>
      %144 = vector.broadcast %140 : f32 to vector<2x16x128xf32>
      %145 = arith.mulf %144, %143 : vector<2x16x128xf32>
      %146 = arith.addf %139, %145 : vector<2x16x128xf32>
      %c8 = arith.constant 8 : index
      %147 = memref.load %arg1[%c8] : memref<25xf32, #tpu.memory_space<smem>>
      %c1_80 = arith.constant 1 : index
      %c0_81 = arith.constant 0 : index
      %148 = arith.index_cast %24 : i32 to index
      %c0_82 = arith.constant 0 : index
      %149 = vector.load %arg4[%c1_80, %c0_81, %148, %c0_82] : memref<5x2x128x128xf32, #tpu.memory_space<vmem>>, vector<1x2x16x128xf32>
      %150 = vector.shape_cast %149 : vector<1x2x16x128xf32> to vector<2x16x128xf32>
      %151 = vector.broadcast %147 : f32 to vector<2x16x128xf32>
      %152 = arith.mulf %151, %150 : vector<2x16x128xf32>
      %153 = arith.addf %146, %152 : vector<2x16x128xf32>
      %c13 = arith.constant 13 : index
      %154 = memref.load %arg1[%c13] : memref<25xf32, #tpu.memory_space<smem>>
      %c2_83 = arith.constant 2 : index
      %c0_84 = arith.constant 0 : index
      %155 = arith.index_cast %24 : i32 to index
      %c0_85 = arith.constant 0 : index
      %156 = vector.load %arg4[%c2_83, %c0_84, %155, %c0_85] : memref<5x2x128x128xf32, #tpu.memory_space<vmem>>, vector<1x2x16x128xf32>
      %157 = vector.shape_cast %156 : vector<1x2x16x128xf32> to vector<2x16x128xf32>
      %158 = vector.broadcast %154 : f32 to vector<2x16x128xf32>
      %159 = arith.mulf %158, %157 : vector<2x16x128xf32>
      %160 = arith.addf %153, %159 : vector<2x16x128xf32>
      %c18 = arith.constant 18 : index
      %161 = memref.load %arg1[%c18] : memref<25xf32, #tpu.memory_space<smem>>
      %c3_86 = arith.constant 3 : index
      %c0_87 = arith.constant 0 : index
      %162 = arith.index_cast %24 : i32 to index
      %c0_88 = arith.constant 0 : index
      %163 = vector.load %arg4[%c3_86, %c0_87, %162, %c0_88] : memref<5x2x128x128xf32, #tpu.memory_space<vmem>>, vector<1x2x16x128xf32>
      %164 = vector.shape_cast %163 : vector<1x2x16x128xf32> to vector<2x16x128xf32>
      %165 = vector.broadcast %161 : f32 to vector<2x16x128xf32>
      %166 = arith.mulf %165, %164 : vector<2x16x128xf32>
      %167 = arith.addf %160, %166 : vector<2x16x128xf32>
      %c23 = arith.constant 23 : index
      %168 = memref.load %arg1[%c23] : memref<25xf32, #tpu.memory_space<smem>>
      %c4_89 = arith.constant 4 : index
      %c0_90 = arith.constant 0 : index
      %169 = arith.index_cast %24 : i32 to index
      %c0_91 = arith.constant 0 : index
      %170 = vector.load %arg4[%c4_89, %c0_90, %169, %c0_91] : memref<5x2x128x128xf32, #tpu.memory_space<vmem>>, vector<1x2x16x128xf32>
      %171 = vector.shape_cast %170 : vector<1x2x16x128xf32> to vector<2x16x128xf32>
      %172 = vector.broadcast %168 : f32 to vector<2x16x128xf32>
      %173 = arith.mulf %172, %171 : vector<2x16x128xf32>
      %174 = arith.addf %167, %173 : vector<2x16x128xf32>
      %c127_i32_92 = arith.constant 127 : i32
      %175 = tpu.dynamic_rotate %174 by %c127_i32_92 dim 2 : vector<2x16x128xf32>, i32 -> vector<2x16x128xf32>
      %176 = arith.addf %138, %175 : vector<2x16x128xf32>
      %cst_93 = arith.constant 0.000000e+00 : f32
      %177 = vector.broadcast %cst_93 : f32 to vector<2x16x128xf32>
      %c4_94 = arith.constant 4 : index
      %178 = memref.load %arg1[%c4_94] : memref<25xf32, #tpu.memory_space<smem>>
      %c0_95 = arith.constant 0 : index
      %c0_96 = arith.constant 0 : index
      %179 = arith.index_cast %24 : i32 to index
      %c0_97 = arith.constant 0 : index
      %180 = vector.load %arg4[%c0_95, %c0_96, %179, %c0_97] : memref<5x2x128x128xf32, #tpu.memory_space<vmem>>, vector<1x2x16x128xf32>
      %181 = vector.shape_cast %180 : vector<1x2x16x128xf32> to vector<2x16x128xf32>
      %182 = vector.broadcast %178 : f32 to vector<2x16x128xf32>
      %183 = arith.mulf %182, %181 : vector<2x16x128xf32>
      %184 = arith.addf %177, %183 : vector<2x16x128xf32>
      %c9 = arith.constant 9 : index
      %185 = memref.load %arg1[%c9] : memref<25xf32, #tpu.memory_space<smem>>
      %c1_98 = arith.constant 1 : index
      %c0_99 = arith.constant 0 : index
      %186 = arith.index_cast %24 : i32 to index
      %c0_100 = arith.constant 0 : index
      %187 = vector.load %arg4[%c1_98, %c0_99, %186, %c0_100] : memref<5x2x128x128xf32, #tpu.memory_space<vmem>>, vector<1x2x16x128xf32>
      %188 = vector.shape_cast %187 : vector<1x2x16x128xf32> to vector<2x16x128xf32>
      %189 = vector.broadcast %185 : f32 to vector<2x16x128xf32>
      %190 = arith.mulf %189, %188 : vector<2x16x128xf32>
      %191 = arith.addf %184, %190 : vector<2x16x128xf32>
      %c14 = arith.constant 14 : index
      %192 = memref.load %arg1[%c14] : memref<25xf32, #tpu.memory_space<smem>>
      %c2_101 = arith.constant 2 : index
      %c0_102 = arith.constant 0 : index
      %193 = arith.index_cast %24 : i32 to index
      %c0_103 = arith.constant 0 : index
      %194 = vector.load %arg4[%c2_101, %c0_102, %193, %c0_103] : memref<5x2x128x128xf32, #tpu.memory_space<vmem>>, vector<1x2x16x128xf32>
      %195 = vector.shape_cast %194 : vector<1x2x16x128xf32> to vector<2x16x128xf32>
      %196 = vector.broadcast %192 : f32 to vector<2x16x128xf32>
      %197 = arith.mulf %196, %195 : vector<2x16x128xf32>
      %198 = arith.addf %191, %197 : vector<2x16x128xf32>
      %c19 = arith.constant 19 : index
      %199 = memref.load %arg1[%c19] : memref<25xf32, #tpu.memory_space<smem>>
      %c3_104 = arith.constant 3 : index
      %c0_105 = arith.constant 0 : index
      %200 = arith.index_cast %24 : i32 to index
      %c0_106 = arith.constant 0 : index
      %201 = vector.load %arg4[%c3_104, %c0_105, %200, %c0_106] : memref<5x2x128x128xf32, #tpu.memory_space<vmem>>, vector<1x2x16x128xf32>
      %202 = vector.shape_cast %201 : vector<1x2x16x128xf32> to vector<2x16x128xf32>
      %203 = vector.broadcast %199 : f32 to vector<2x16x128xf32>
      %204 = arith.mulf %203, %202 : vector<2x16x128xf32>
      %205 = arith.addf %198, %204 : vector<2x16x128xf32>
      %c24 = arith.constant 24 : index
      %206 = memref.load %arg1[%c24] : memref<25xf32, #tpu.memory_space<smem>>
      %c4_107 = arith.constant 4 : index
      %c0_108 = arith.constant 0 : index
      %207 = arith.index_cast %24 : i32 to index
      %c0_109 = arith.constant 0 : index
      %208 = vector.load %arg4[%c4_107, %c0_108, %207, %c0_109] : memref<5x2x128x128xf32, #tpu.memory_space<vmem>>, vector<1x2x16x128xf32>
      %209 = vector.shape_cast %208 : vector<1x2x16x128xf32> to vector<2x16x128xf32>
      %210 = vector.broadcast %206 : f32 to vector<2x16x128xf32>
      %211 = arith.mulf %210, %209 : vector<2x16x128xf32>
      %212 = arith.addf %205, %211 : vector<2x16x128xf32>
      %c126_i32_110 = arith.constant 126 : i32
      %213 = tpu.dynamic_rotate %212 by %c126_i32_110 dim 2 : vector<2x16x128xf32>, i32 -> vector<2x16x128xf32>
      %214 = arith.addf %176, %213 : vector<2x16x128xf32>
      %c0_111 = arith.constant 0 : index
      %215 = arith.index_cast %24 : i32 to index
      %c0_112 = arith.constant 0 : index
      %216 = vector.load %arg3[%c0_111, %215, %c0_112] : memref<2x128x128xf32, #tpu.memory_space<vmem>>, vector<2x16x128xf32>
      tpu.vector_store %arg3[%c0_111, %215, %c0_112], %214 {strides = array<i32>} : memref<2x128x128xf32, #tpu.memory_space<vmem>>, vector<2x16x128xf32>,
    }
    %c8_i32_19 = arith.constant 8 : i32
    return
  }
  func.func @transform_0(%arg0: i32) -> i32 {
    %c0_i32 = arith.constant 0 : i32
    %c0_i32_0 = arith.constant 0 : i32
    return %c0_i32 : i32
  }
  func.func @transform_1(%arg0: i32) -> (i32, i32, i32) {
    %c0_i32 = arith.constant 0 : i32
    %c0_i32_0 = arith.constant 0 : i32
    %c0_i32_1 = arith.constant 0 : i32
    return %arg0, %c0_i32, %c0_i32_0 : i32, i32, i32
  }
  func.func @transform_2(%arg0: i32) -> (i32, i32, i32) {
    %c0_i32 = arith.constant 0 : i32
    %c0_i32_0 = arith.constant 0 : i32
    %c0_i32_1 = arith.constant 0 : i32
    return %arg0, %c0_i32, %c0_i32_0 : i32, i32, i32
  }
}

</mosaic_0001>

<bundles_post_ra>
// kernel: tpu_custom_call.1
= control target key start
LH: loop header
LB: loop body
LE: loop exit
PB: predicated region body
PF: predicated region fallthrough
CT: control target
= control target key end

     0   :  { %7 = vsyncpa [#allocation6], 0  ;;  %s2366_s0 = inlined_call_operand.hbm [shape: f32[25], index: 0, kind: input, shape index: {}]   ;;  %s2367_s1 = inlined_call_operand.hbm [shape: f32[6,128,128], index: 1, kind: input, shape index: {}]   ;;  %s2368_s2 = inlined_call_operand.hbm [shape: f32[6,128,128], index: 2, kind: output, shape index: {}]  }
   0x1   :  { %8 = vsyncpa [#allocation4], 0 }
   0x2   :  { %10 = vsyncpa [#allocation4 + $0x1], 0 }
   0x3   :  { %11 = vsyncpa [#allocation5], 0 }
   0x4   :  { %13 = vsyncpa [#allocation5 + $0x1], 0  ;;  %s1388_s9 = smov 0   ;;  %s1390_s10 = smov 0  }
   0x5   :  { %s1392_s11 = smov 0   ;;  %s1394_s12 = smov 0  }
   0x6 LB: > { %s1409_s13 = sadd.s32 4294967295, %s1356_s12   ;;  %s1099_s14 = sadd.s32 4294967294, %s1356_s12   ;;  %s1356_s12 = sphi %s1394_s12, %s2386_s12   ;;  %s1352_s11 = sphi %s1392_s11, %s2385_s11   ;;  %s1348_s10 = sphi %s1390_s10, %s2384_s10   ;;  %s1344_s9 = sphi %s1388_s9, %s2383_s9  }
   0x7   : > { %s1413_s15 = sadd.s32 1, %s1356_s12   ;;  %s47_s16 = sadd.s32 1, %s1352_s11 }
   0x8   : > { %s44_s17 = ssub.s32 %s1356_s12, %s1413_s15  ;;  %p54_p0 = scmp.ne.s32.totalorder %s1352_s11, %s1348_s10 }
   0x9   : > { %p45_p1 = scmp.eq.s32.totalorder %s44_s17, 0  ;;  %p55_p2 = scmp.eq.s32.totalorder %s1356_s12, 0 }
   0xa   : > { %p60_p3 = scmp.ne.s32.totalorder %s1348_s10, %s1344_s9  ;;  %p2370_p4 = scmp.eq.s32.totalorder %s1409_s13, 0 }
   0xb   : > { %s1425_s18 = scalar_select %p45_p1, %s1352_s11, %s47_s16  }
   0xc   : > { %p1427_p5 = por %p55_p2, %p54_p0  ;;  %p1433_p6 = por %p2370_p4, %p60_p3 }
   0xd   : > { %p84_p7 = scmp.eq.s32.totalorder %s1409_s13, 2  ;;  %p90_p8 = scmp.eq.s32.totalorder %s1099_s14, 2 }
   0xe   : > { %s2373_s20 = scalar_select %p1433_p6, 1, 0 }
   0xf   : > { %p1100_p9 = scmp.ge.s32.totalorder %s1356_s12, 1  ;;  %p97_p10 = scmp.lt.s32.totalorder %s1356_s12, 4 }
  0x10   : > { %p1440_p11 = por %p84_p7, %p54_p0  ;;  %p1444_p12 = por %p90_p8, %p60_p3 }
  0x11   : > { %p1448_p13 = pnand %p1100_p9, %p97_p10  ;;  %p1187_p2 = scmp.lt.s32.totalorder %s1356_s12, 3 }
  0x12   : > { %s2374_s21 = scalar_select %p1440_p11, 1, 0 }
  0x13   : > { %s2375_s22 = scalar_select %p1444_p12, 1, 0 }
  0x14   : > { %p1174_p1 = pneg %p1448_p13  ;;  %s119_s24 = sand.u32 1, %s1352_s11  }
  0x15   : > { %s1163_s25 = sshll.u32 %s1356_s12, 12  ;;  %p1461_p0 = pnand %p1187_p2, %p1427_p5 }
  0x16   : > { %p1175_p6 = pnand %p1174_p1, %p2370_p4  ;;  %s1103_s27 = sshll.u32 %s119_s24, 8 }
  0x17   : > { %s1239_s30 = scalar_lea.hbm %s2366_s0, 16 }
  0x18   : > { %p1240_p3 = scmp.ne.s32.totalorder %s2366_s0, %s1239_s30  ;;  %p1241_p7 = pneg %p1175_p6 }
  0x19   : > { %p1246_p10 = scmp.lt.u32.totalorder %s1239_s30, %s2366_s0 }
  0x1a   : > { %p1242_p8 = pnand %p1241_p7, %p1240_p3 }
  0x1c   : > { %p1243_p9 = pneg %p1242_p8 }
  0x1e   : > { %p1248_p5 = pnand %p1246_p10, %p1243_p9 }
  0x20   : > { %1251 = shalt.err (!%p1248_p5)
}
  0x21   : > { %s1362_s7 = smov [#allocation3]   ;;  %s1480_s19 = scalar_lea.hbm %s2367_s1, %s1163_s25 }
  0x22   : > { %1177 = dma.hbm_to_smem (!%p1175_p6), %s2366_s0, 16, %s1362_s7, [#allocation6]  }
  0x23   : > { %s123_s28 = scalar_lea.vmem [#allocation7], %s1103_s27  ;;  %s1484_s30 = scalar_lea.sflag [#allocation4], %s119_s24 }
  0x24   : > { %s131_s29 = sshll.u32 %s123_s28, 4  ;;  %s1252_s3 = scalar_lea.hbm %s1480_s19, 4096  ;;  %s1482_s29 = int_to_ptr.vmem [resolvable:$true] %s131_s29 }
  0x25   : > { %p1253_p1 = scmp.ne.s32.totalorder %s1480_s19, %s1252_s3  ;;  %p1254_p2 = pneg %p1461_p0 }
  0x26   : > { %s1257_s5 = scalar_lea.hbm %s2367_s1, 12288  ;;  %p1258_p7 = scmp.lt.u32.totalorder %s1480_s19, %s2367_s1 }
  0x27   : > { %p1255_p6 = pnand %p1254_p2, %p1253_p1  ;;  %p1259_p8 = scmp.lt.u32.totalorder %s1257_s5, %s1252_s3 }
  0x28   : > { %p1261_p10 = scmp.lt.u32.totalorder %s1252_s3, %s1480_s19 }
  0x29   : > { %p1256_p3 = pneg %p1255_p6  ;;  %p1260_p9 = por %p1259_p8, %p1258_p7 }
  0x2b   : > { %p1262_p5 = por %p1261_p10, %p1260_p9 }
  0x2d   : > { %p1263_p4 = pnand %p1262_p5, %p1256_p3 }
  0x2f   : > { %1266 = shalt.err (!%p1263_p4)
}
  0x30   : > { %s1267_s24 = scalar_lea.vmem %s1482_s29, 4096  ;;  %s1363_s27 = smov [#allocation7]  }
  0x31   : > { %p1268_p1 = scmp.ne.s32.totalorder %s1482_s29, %s1267_s24  ;;  %s1272_s8 = sshll.u32 %s1363_s27, 4  ;;  %s1273_s8 = int_to_ptr.vmem [resolvable:$false] %s1272_s8 }
  0x32   : > { %s1274_s14 = scalar_lea.vmem %s1273_s8, 8192  ;;  %p1275_p11 = scmp.lt.s32.totalorder %s1482_s29, %s1273_s8 }
  0x33   : > { %p1270_p6 = pnand %p1268_p1, %p1254_p2  ;;  %p1276_p7 = scmp.lt.s32.totalorder %s1274_s14, %s1267_s24 }
  0x35   : > { %p1271_p12 = pneg %p1270_p6  ;;  %p1277_p8 = por %p1276_p7, %p1275_p11 }
  0x37   : > { %p1278_p9 = pnand %p1277_p8, %p1271_p12 }
  0x39   : > { %1281 = shalt.err (!%p1278_p9)
}
  0x3a   : > { %s1364_s16 = smov 128   ;;  %s1365_s17 = smov 8  }
  0x3b   : > { %1181 = dma.hbm_to_vmem [thread:$0]  (!%p1461_p0), %s1480_s19, 4096, %s1482_s29, %s1484_s30, %s1364_s16, %s1364_s16, %s1365_s17  }
  0x3c   : > { %143 = sbr.rel (%p1448_p13) target bundleno = 342 (0x156), region = 28  ;;  %p2378_p4 = scmp.eq.s32.totalorder (!%p1448_p13), %s1409_s13, 0 }
  0x43   : > { %1331 = dma.done.wait (%p2378_p4), [#allocation6], 16   ;;  %p2379_p2 = pmov %p2378_p4 }
  0x44   : > { %s1519_s28 = sand.u32 1, %s1348_s10   ;;  %p2380_p11 = scmp.ne.s32.totalorder %s2373_s20, 0 }
  0x45   : > { %1333 = vsyncadd (%p2379_p2), [#allocation6], 4294967280  ;;  %s1109_s3 = sshll.u32 %s1519_s28, 8  ;;  %s150_s25 = scalar_lea.sflag [#allocation4], %s1519_s28 }
  0x46   : > { %s1525_s26 = scalar_lea.vmem [#allocation7], %s1109_s3 }
  0x47   : > { %1335 = dma.done.wait (%p2380_p11), %s150_s25, 4096  }
  0x48   : > { %1337 = vsyncadd (%p2380_p11), %s150_s25, 4294963200 }
  0x49   : > { %158 = sfence }
  0x4a   : > { %v1532_v0 = vld [vmem:[%s1525_s26] sm:$0xff]  ;;  %v1535_v1 = vld [vmem:[%s1525_s26 + $0x78] sm:$0xff]  ;;  %v241_v2 = vlaneseq  ;;  %v1538_v3 = vld [vmem:[%s1525_s26 + $0x8] sm:$0xff]  ;;  %s2063_s20 = scalar_lea.vmem [#allocation8], %s1109_s3  ;;  %s2065_s23 = smov 0  }
  0x4b   : > { %v209_v4 = vrot.slane %v1532_v0, 6  ;;  %v239_v5 = vrot.slane %v1535_v1, 6  ;;  %407 = vst [vmem:[#allocation2 + $0x200] sm:$0xff] %v1532_v0  ;;  %422 = vst [vmem:[#allocation2 + $0x278] sm:$0xff] %v1535_v1  ;;  %v211_v6 = vrot.slane %v1538_v3, 6  ;;  %v1547_v7 = vld [vmem:[%s1525_s26 + $0x10] sm:$0xff] }
  0x4c   : > { %408 = vst [vmem:[#allocation2 + $0x208] sm:$0xff] %v1538_v3  ;;  %v1550_v8 = vld [vmem:[%s1525_s26 + $0x18] sm:$0xff]  ;;  %v1553_v9 = vld [vmem:[%s1525_s26 + $0x20] sm:$0xff]  ;;  %v1555_v10 = vshrl.u32 %v241_v2, 7  ;;  %v213_v11 = vrot.slane %v1547_v7, 6  ;;  %409 = vst [vmem:[#allocation2 + $0x210] sm:$0xff] %v1547_v7 }
  0x4d   : > { %v215_v12 = vrot.slane %v1550_v8, 6  ;;  %410 = vst [vmem:[#allocation2 + $0x218] sm:$0xff] %v1550_v8  ;;  %v217_v13 = vrot.slane %v1553_v9, 6  ;;  %411 = vst [vmem:[#allocation2 + $0x220] sm:$0xff] %v1553_v9  ;;  %v1564_v14 = vld [vmem:[%s1525_s26 + $0x28] sm:$0xff]  ;;  %v1567_v15 = vld [vmem:[%s1525_s26 + $0x30] sm:$0xff] }
  0x4e   : > { %v219_v16 = vrot.slane %v1564_v14, 6  ;;  %412 = vst [vmem:[#allocation2 + $0x228] sm:$0xff] %v1564_v14  ;;  %v221_v17 = vrot.slane %v1567_v15, 6  ;;  %413 = vst [vmem:[#allocation2 + $0x230] sm:$0xff] %v1567_v15  ;;  %v1574_v18 = vld [vmem:[%s1525_s26 + $0x38] sm:$0xff]  ;;  %v1577_v19 = vld [vmem:[%s1525_s26 + $0x40] sm:$0xff] }
  0x4f   : > { %v1580_v20 = vld [vmem:[%s1525_s26 + $0x48] sm:$0xff]  ;;  %v308_v21 = vrot.slane %v1532_v0, 7  ;;  %vm243_vm0 = vcmp.lt.s32.totalorder %v1555_v10, 2  ;;  %v223_v22 = vrot.slane %v1574_v18, 6  ;;  %414 = vst [vmem:[#allocation2 + $0x238] sm:$0xff] %v1574_v18  ;;  %v225_v23 = vrot.slane %v1577_v19, 6 }
  0x50   : > { %415 = vst [vmem:[#allocation2 + $0x240] sm:$0xff] %v1577_v19  ;;  %v227_v24 = vrot.slane %v1580_v20, 6  ;;  %416 = vst [vmem:[#allocation2 + $0x248] sm:$0xff] %v1580_v20  ;;  %v1591_v25 = vld [vmem:[%s1525_s26 + $0x50] sm:$0xff]  ;;  %v1594_v26 = vld [vmem:[%s1525_s26 + $0x58] sm:$0xff]  ;;  %v274_v27 = vsel %vm243_vm0, %v239_v5, %v209_v4  ;;  %v272_v28 = vsel %vm243_vm0, %v209_v4, %v211_v6  ;;  %v270_v29 = vsel %vm243_vm0, %v211_v6, %v213_v11 }
  0x51   : > { %v268_v30 = vsel %vm243_vm0, %v213_v11, %v215_v12  ;;  %417 = vst [vmem:[#allocation2 + $0x250] sm:$0xff] %v1591_v25  ;;  %418 = vst [vmem:[#allocation2 + $0x258] sm:$0xff] %v1594_v26  ;;  %v1609_v31 = vld [vmem:[%s1525_s26 + $0x60] sm:$0xff]  ;;  %v1612_v32 = vld [vmem:[%s1525_s26 + $0x68] sm:$0xff]  ;;  %v266_v34 = vsel %vm243_vm0, %v215_v12, %v217_v13  ;;  %v264_v35 = vsel %vm243_vm0, %v217_v13, %v219_v16  ;;  %v229_v43 = vrot.slane %v1591_v25, 6 }
  0x52   : > { %v1615_v33 = vld [vmem:[%s1525_s26 + $0x70] sm:$0xff]  ;;  %276 = vst [vmem:[#allocation2] sm:$0xff] %v274_v27  ;;  %277 = vst [vmem:[#allocation2 + $0x8] sm:$0xff] %v272_v28  ;;  %v262_v36 = vsel %vm243_vm0, %v219_v16, %v221_v17  ;;  %v260_v37 = vsel %vm243_vm0, %v221_v17, %v223_v22  ;;  %v1629_v38 = vld [vmem:[%s1525_s26 + $0x80] sm:$0xff]  ;;  %v258_v41 = vsel %vm243_vm0, %v223_v22, %v225_v23  ;;  %v231_v44 = vrot.slane %v1594_v26, 6 }
  0x53   : > { %278 = vst [vmem:[#allocation2 + $0x10] sm:$0xff] %v270_v29  ;;  %279 = vst [vmem:[#allocation2 + $0x18] sm:$0xff] %v268_v30  ;;  %v1632_v39 = vld [vmem:[%s1525_s26 + $0xf8] sm:$0xff]  ;;  %v1635_v40 = vld [vmem:[%s1525_s26 + $0x88] sm:$0xff]  ;;  %v256_v42 = vsel %vm243_vm0, %v225_v23, %v227_v24  ;;  %v233_v48 = vrot.slane %v1609_v31, 6  ;;  %v235_v49 = vrot.slane %v1612_v32, 6  ;;  %v254_v54 = vsel %vm243_vm0, %v227_v24, %v229_v43 }
  0x54   : > { %419 = vst [vmem:[#allocation2 + $0x260] sm:$0xff] %v1609_v31  ;;  %420 = vst [vmem:[#allocation2 + $0x268] sm:$0xff] %v1612_v32  ;;  %v1647_v45 = vld [vmem:[%s1525_s26 + $0x90] sm:$0xff]  ;;  %v1650_v46 = vld [vmem:[%s1525_s26 + $0x98] sm:$0xff]  ;;  %v237_v50 = vrot.slane %v1615_v33, 6  ;;  %v210_v51 = vrot.slane %v1629_v38, 6  ;;  %v252_v55 = vsel %vm243_vm0, %v229_v43, %v231_v44 }
  0x55   : > { %421 = vst [vmem:[#allocation2 + $0x270] sm:$0xff] %v1615_v33  ;;  %280 = vst [vmem:[#allocation2 + $0x20] sm:$0xff] %v266_v34  ;;  %v1653_v47 = vld [vmem:[%s1525_s26 + $0xa0] sm:$0xff]  ;;  %v1663_v52 = vld [vmem:[%s1525_s26 + $0xa8] sm:$0xff]  ;;  %v240_v56 = vrot.slane %v1632_v39, 6  ;;  %v212_v57 = vrot.slane %v1635_v40, 6  ;;  %v250_v61 = vsel %vm243_vm0, %v231_v44, %v233_v48  ;;  %v248_v62 = vsel %vm243_vm0, %v233_v48, %v235_v49 }
  0x56   : > { %281 = vst [vmem:[#allocation2 + $0x28] sm:$0xff] %v264_v35  ;;  %282 = vst [vmem:[#allocation2 + $0x30] sm:$0xff] %v262_v36  ;;  %v1666_v53 = vld [vmem:[%s1525_s26 + $0xb0] sm:$0xff]  ;;  %v1677_v58 = vld [vmem:[%s1525_s26 + $0xb8] sm:$0xff]  ;;  %v246_v63 = vsel %vm243_vm0, %v235_v49, %v237_v50  ;;  %v244_v2 = vsel %vm243_vm0, %v237_v50, %v239_v5  ;;  %v214_v13 = vrot.slane %v1647_v45, 6  ;;  %v216_v16 = vrot.slane %v1650_v46, 6 }
  0x57   : > { %283 = vst [vmem:[#allocation2 + $0x38] sm:$0xff] %v260_v37  ;;  %423 = vst [vmem:[#allocation2 + $0x280] sm:$0xff] %v1629_v38  ;;  %v1680_v59 = vld [vmem:[%s1525_s26 + $0xc0] sm:$0xff]  ;;  %v1683_v60 = vld [vmem:[%s1525_s26 + $0xc8] sm:$0xff]  ;;  %v275_v5 = vsel %vm243_vm0, %v240_v56, %v210_v51  ;;  %v273_v12 = vsel %vm243_vm0, %v210_v51, %v212_v57  ;;  %v218_v23 = vrot.slane %v1653_v47, 6  ;;  %v220_v24 = vrot.slane %v1663_v52, 6 }
  0x58   : > { %438 = vst [vmem:[#allocation2 + $0x2f8] sm:$0xff] %v1632_v39  ;;  %424 = vst [vmem:[#allocation2 + $0x288] sm:$0xff] %v1635_v40  ;;  %v1699_v4 = vld [vmem:[%s1525_s26 + $0xd0] sm:$0xff]  ;;  %v1702_v6 = vld [vmem:[%s1525_s26 + $0xd8] sm:$0xff]  ;;  %v222_v27 = vrot.slane %v1666_v53, 6  ;;  %v224_v28 = vrot.slane %v1677_v58, 6  ;;  %v271_v29 = vsel %vm243_vm0, %v212_v57, %v214_v13  ;;  %v269_v30 = vsel %vm243_vm0, %v214_v13, %v216_v16 }
  0x59   : > { %284 = vst [vmem:[#allocation2 + $0x40] sm:$0xff] %v258_v41  ;;  %285 = vst [vmem:[#allocation2 + $0x48] sm:$0xff] %v256_v42  ;;  %v1705_v11 = vld [vmem:[%s1525_s26 + $0xe0] sm:$0xff]  ;;  %v1719_v17 = vld [vmem:[%s1525_s26 + $0xe8] sm:$0xff]  ;;  %v226_v34 = vrot.slane %v1680_v59, 6  ;;  %v228_v35 = vrot.slane %v1683_v60, 6  ;;  %v267_v36 = vsel %vm243_vm0, %v216_v16, %v218_v23  ;;  %v265_v37 = vsel %vm243_vm0, %v218_v23, %v220_v24 }
  0x5a   : > { %425 = vst [vmem:[#allocation2 + $0x290] sm:$0xff] %v1647_v45  ;;  %426 = vst [vmem:[#allocation2 + $0x298] sm:$0xff] %v1650_v46  ;;  %v1722_v22 = vld [vmem:[%s1525_s26 + $0xf0] sm:$0xff]  ;;  %v263_v41 = vsel %vm243_vm0, %v220_v24, %v222_v27  ;;  %v261_v42 = vsel %vm243_vm0, %v222_v27, %v224_v28  ;;  %v230_v48 = vrot.slane %v1699_v4, 6  ;;  %v232_v49 = vrot.slane %v1702_v6, 6 }
  0x5b   : > { %427 = vst [vmem:[#allocation2 + $0x2a0] sm:$0xff] %v1653_v47  ;;  %428 = vst [vmem:[#allocation2 + $0x2a8] sm:$0xff] %v1663_v52  ;;  %v259_v43 = vsel %vm243_vm0, %v224_v28, %v226_v34  ;;  %v257_v44 = vsel %vm243_vm0, %v226_v34, %v228_v35  ;;  %v234_v50 = vrot.slane %v1705_v11, 6  ;;  %v236_v51 = vrot.slane %v1719_v17, 6 }
  0x5c   : > { %429 = vst [vmem:[#allocation2 + $0x2b0] sm:$0xff] %v1666_v53  ;;  %286 = vst [vmem:[#allocation2 + $0x50] sm:$0xff] %v254_v54  ;;  %v238_v54 = vrot.slane %v1722_v22, 6  ;;  %v255_v57 = vsel %vm243_vm0, %v228_v35, %v230_v48  ;;  %vm340_vm1 = vcmp.lt.s32.totalorder %v1555_v10, 1  ;;  %v312_v23 = vrot.slane %v1547_v7, 7 }
  0x5d   : > { %287 = vst [vmem:[#allocation2 + $0x58] sm:$0xff] %v252_v55  ;;  %430 = vst [vmem:[#allocation2 + $0x2b8] sm:$0xff] %v1677_v58  ;;  %v338_v55 = vrot.slane %v1535_v1, 7  ;;  %v314_v24 = vrot.slane %v1550_v8, 7  ;;  %v318_v27 = vrot.slane %v1564_v14, 7  ;;  %v320_v28 = vrot.slane %v1567_v15, 7 }
  0x5e   : > { %431 = vst [vmem:[#allocation2 + $0x2c0] sm:$0xff] %v1680_v59  ;;  %432 = vst [vmem:[#allocation2 + $0x2c8] sm:$0xff] %v1683_v60  ;;  %v324_v34 = vrot.slane %v1577_v19, 7  ;;  %v326_v35 = vrot.slane %v1580_v20, 7  ;;  %vm471_vm2 = vcmp.lt.s32.totalorder %v1555_v10, 7  ;;  %vm569_vm3 = vcmp.lt.s32.totalorder %v1555_v10, 6 }
  0x5f   : > { %288 = vst [vmem:[#allocation2 + $0x60] sm:$0xff] %v250_v61  ;;  %289 = vst [vmem:[#allocation2 + $0x68] sm:$0xff] %v248_v62  ;;  %v253_v61 = vsel %vm243_vm0, %v230_v48, %v232_v49  ;;  %v310_v62 = vrot.slane %v1538_v3, 7  ;;  %v371_v13 = vsel %vm340_vm1, %v338_v55, %v308_v21  ;;  %v328_v48 = vrot.slane %v1591_v25, 7 }
  0x60   : > { %290 = vst [vmem:[#allocation2 + $0x70] sm:$0xff] %v246_v63  ;;  %291 = vst [vmem:[#allocation2 + $0x78] sm:$0xff] %v244_v2  ;;  %v251_v63 = vsel %vm243_vm0, %v232_v49, %v234_v50  ;;  %v249_v2 = vsel %vm243_vm0, %v234_v50, %v236_v51  ;;  %v330_v49 = vrot.slane %v1594_v26, 7  ;;  %v332_v50 = vrot.slane %v1609_v31, 7 }
  0x61   : > { %433 = vst [vmem:[#allocation2 + $0x2d0] sm:$0xff] %v1699_v4  ;;  %434 = vst [vmem:[#allocation2 + $0x2d8] sm:$0xff] %v1702_v6  ;;  %v369_v16 = vsel %vm340_vm1, %v308_v21, %v310_v62  ;;  %v365_v21 = vsel %vm340_vm1, %v312_v23, %v314_v24 }
  0x62   : > { %435 = vst [vmem:[#allocation2 + $0x2e0] sm:$0xff] %v1705_v11  ;;  %292 = vst [vmem:[#allocation2 + $0x80] sm:$0xff] %v275_v5  ;;  %v247_v5 = vsel %vm243_vm0, %v236_v51, %v238_v54  ;;  %v334_v51 = vrot.slane %v1612_v32, 7 }
  0x63   : > { %293 = vst [vmem:[#allocation2 + $0x88] sm:$0xff] %v273_v12  ;;  %436 = vst [vmem:[#allocation2 + $0x2e8] sm:$0xff] %v1719_v17  ;;  %v245_v12 = vsel %vm243_vm0, %v238_v54, %v240_v56  ;;  %v316_v56 = vrot.slane %v1553_v9, 7  ;;  %v336_v54 = vrot.slane %v1615_v33, 7 }
  0x64   : > { %437 = vst [vmem:[#allocation2 + $0x2f0] sm:$0xff] %v1722_v22  ;;  %294 = vst [vmem:[#allocation2 + $0x90] sm:$0xff] %v271_v29  ;;  %v322_v29 = vrot.slane %v1574_v18, 7 }
  0x65   : > { %295 = vst [vmem:[#allocation2 + $0x98] sm:$0xff] %v269_v30  ;;  %296 = vst [vmem:[#allocation2 + $0xa0] sm:$0xff] %v267_v36  ;;  %v367_v30 = vsel %vm340_vm1, %v310_v62, %v312_v23  ;;  %v363_v36 = vsel %vm340_vm1, %v314_v24, %v316_v56  ;;  %v349_v62 = vsel %vm340_vm1, %v328_v48, %v330_v49 }
  0x66   : > { %297 = vst [vmem:[#allocation2 + $0xa8] sm:$0xff] %v265_v37  ;;  %298 = vst [vmem:[#allocation2 + $0xb0] sm:$0xff] %v263_v41  ;;  %v361_v37 = vsel %vm340_vm1, %v316_v56, %v318_v27  ;;  %v359_v41 = vsel %vm340_vm1, %v318_v27, %v320_v28  ;;  %v313_v56 = vrot.slane %v1647_v45, 7  ;;  %v315_v27 = vrot.slane %v1650_v46, 7 }
  0x67   : > { %299 = vst [vmem:[#allocation2 + $0xb8] sm:$0xff] %v261_v42  ;;  %300 = vst [vmem:[#allocation2 + $0xc0] sm:$0xff] %v259_v43  ;;  %v357_v42 = vsel %vm340_vm1, %v320_v28, %v322_v29  ;;  %v355_v43 = vsel %vm340_vm1, %v322_v29, %v324_v34  ;;  %v317_v28 = vrot.slane %v1653_v47, 7  ;;  %v321_v29 = vrot.slane %v1666_v53, 7 }
  0x68   : > { %301 = vst [vmem:[#allocation2 + $0xc8] sm:$0xff] %v257_v44  ;;  %302 = vst [vmem:[#allocation2 + $0xd0] sm:$0xff] %v255_v57  ;;  %v353_v44 = vsel %vm340_vm1, %v324_v34, %v326_v35  ;;  %v309_v57 = vrot.slane %v1629_v38, 7  ;;  %v366_v34 = vsel %vm340_vm1, %v313_v56, %v315_v27 }
  0x69   : > { %303 = vst [vmem:[#allocation2 + $0xd8] sm:$0xff] %v253_v61  ;;  %304 = vst [vmem:[#allocation2 + $0xe0] sm:$0xff] %v251_v63  ;;  %v351_v61 = vsel %vm340_vm1, %v326_v35, %v328_v48  ;;  %v339_v63 = vrot.slane %v1632_v39, 7  ;;  %v325_v35 = vrot.slane %v1680_v59, 7 }
  0x6a   : > { %305 = vst [vmem:[#allocation2 + $0xe8] sm:$0xff] %v249_v2  ;;  %306 = vst [vmem:[#allocation2 + $0xf0] sm:$0xff] %v247_v5  ;;  %v311_v2 = vrot.slane %v1635_v40, 7  ;;  %v347_v5 = vsel %vm340_vm1, %v330_v49, %v332_v50  ;;  %v329_v49 = vrot.slane %v1699_v4, 7 }
  0x6b   : > { %307 = vst [vmem:[#allocation2 + $0xf8] sm:$0xff] %v245_v12  ;;  %374 = vst [vmem:[#allocation2 + $0x100] sm:$0xff] %v371_v13  ;;  %v345_v12 = vsel %vm340_vm1, %v332_v50, %v334_v51  ;;  %v343_v13 = vsel %vm340_vm1, %v334_v51, %v336_v54  ;;  %v372_v23 = vsel %vm340_vm1, %v339_v63, %v309_v57  ;;  %v331_v50 = vrot.slane %v1702_v6, 7 }
  0x6c   : > { %375 = vst [vmem:[#allocation2 + $0x108] sm:$0xff] %v369_v16  ;;  %376 = vst [vmem:[#allocation2 + $0x110] sm:$0xff] %v367_v30  ;;  %v341_v16 = vsel %vm340_vm1, %v336_v54, %v338_v55  ;;  %v370_v24 = vsel %vm340_vm1, %v309_v57, %v311_v2  ;;  %v319_v55 = vrot.slane %v1663_v52, 7  ;;  %v323_v30 = vrot.slane %v1677_v58, 7 }
  0x6d   : > { %377 = vst [vmem:[#allocation2 + $0x118] sm:$0xff] %v365_v21  ;;  %378 = vst [vmem:[#allocation2 + $0x120] sm:$0xff] %v363_v36  ;;  %v368_v21 = vsel %vm340_vm1, %v311_v2, %v313_v56  ;;  %v327_v36 = vrot.slane %v1683_v60, 7  ;;  %v333_v51 = vrot.slane %v1705_v11, 7  ;;  %v335_v54 = vrot.slane %v1719_v17, 7 }
  0x6e   : > { %379 = vst [vmem:[#allocation2 + $0x128] sm:$0xff] %v361_v37  ;;  %380 = vst [vmem:[#allocation2 + $0x130] sm:$0xff] %v359_v41  ;;  %v364_v37 = vsel %vm340_vm1, %v315_v27, %v317_v28  ;;  %v362_v41 = vsel %vm340_vm1, %v317_v28, %v319_v55  ;;  %v337_v57 = vrot.slane %v1722_v22, 7  ;;  %v350_v2 = vsel %vm340_vm1, %v329_v49, %v331_v50 }
  0x6f   : > { %381 = vst [vmem:[#allocation2 + $0x138] sm:$0xff] %v357_v42  ;;  %382 = vst [vmem:[#allocation2 + $0x140] sm:$0xff] %v355_v43  ;;  %v360_v42 = vsel %vm340_vm1, %v319_v55, %v321_v29  ;;  %v358_v43 = vsel %vm340_vm1, %v321_v29, %v323_v30  ;;  %v354_v48 = vsel %vm340_vm1, %v325_v35, %v327_v36  ;;  %v443_v56 = vrot.slane %v1547_v7, 1 }
  0x70   : > { %383 = vst [vmem:[#allocation2 + $0x148] sm:$0xff] %v353_v44  ;;  %384 = vst [vmem:[#allocation2 + $0x150] sm:$0xff] %v351_v61  ;;  %v356_v44 = vsel %vm340_vm1, %v323_v30, %v325_v35  ;;  %v439_v61 = vrot.slane %v1532_v0, 1  ;;  %v445_v27 = vrot.slane %v1550_v8, 1  ;;  %v447_v28 = vrot.slane %v1553_v9, 1 }
  0x71   : > { %385 = vst [vmem:[#allocation2 + $0x158] sm:$0xff] %v349_v62  ;;  %386 = vst [vmem:[#allocation2 + $0x160] sm:$0xff] %v347_v5  ;;  %v352_v62 = vsel %vm340_vm1, %v327_v36, %v329_v49  ;;  %v441_v5 = vrot.slane %v1538_v3, 1  ;;  %v449_v55 = vrot.slane %v1564_v14, 1  ;;  %v451_v29 = vrot.slane %v1567_v15, 1 }
  0x72   : > { %387 = vst [vmem:[#allocation2 + $0x168] sm:$0xff] %v345_v12  ;;  %388 = vst [vmem:[#allocation2 + $0x170] sm:$0xff] %v343_v13  ;;  %v348_v12 = vsel %vm340_vm1, %v331_v50, %v333_v51  ;;  %v346_v13 = vsel %vm340_vm1, %v333_v51, %v335_v54  ;;  %v455_v30 = vrot.slane %v1577_v19, 1  ;;  %v494_v35 = vsel %vm471_vm2, %v445_v27, %v447_v28 }
  0x73   : > { %389 = vst [vmem:[#allocation2 + $0x178] sm:$0xff] %v341_v16  ;;  %390 = vst [vmem:[#allocation2 + $0x180] sm:$0xff] %v372_v23  ;;  %v344_v16 = vsel %vm340_vm1, %v335_v54, %v337_v57  ;;  %v342_v23 = vsel %vm340_vm1, %v337_v57, %v339_v63  ;;  %v453_v63 = vrot.slane %v1574_v18, 1  ;;  %v457_v36 = vrot.slane %v1580_v20, 1 }
  0x74   : > { %391 = vst [vmem:[#allocation2 + $0x188] sm:$0xff] %v370_v24  ;;  %392 = vst [vmem:[#allocation2 + $0x190] sm:$0xff] %v368_v21  ;;  %v500_v24 = vsel %vm471_vm2, %v439_v61, %v441_v5  ;;  %v498_v21 = vsel %vm471_vm2, %v441_v5, %v443_v56  ;;  %v461_v49 = vrot.slane %v1594_v26, 1  ;;  %v463_v50 = vrot.slane %v1609_v31, 1 }
  0x75   : > { %393 = vst [vmem:[#allocation2 + $0x198] sm:$0xff] %v366_v34  ;;  %394 = vst [vmem:[#allocation2 + $0x1a0] sm:$0xff] %v364_v37  ;;  %v496_v34 = vsel %vm471_vm2, %v443_v56, %v445_v27  ;;  %v492_v37 = vsel %vm471_vm2, %v447_v28, %v449_v55  ;;  %v465_v51 = vrot.slane %v1612_v32, 1  ;;  %v467_v54 = vrot.slane %v1615_v33, 1 }
  0x76   : > { %395 = vst [vmem:[#allocation2 + $0x1a8] sm:$0xff] %v362_v41  ;;  %396 = vst [vmem:[#allocation2 + $0x1b0] sm:$0xff] %v360_v42  ;;  %v490_v41 = vsel %vm471_vm2, %v449_v55, %v451_v29  ;;  %v488_v42 = vsel %vm471_vm2, %v451_v29, %v453_v63  ;;  %v469_v57 = vrot.slane %v1535_v1, 1  ;;  %v444_v28 = vrot.slane %v1647_v45, 1 }
  0x77   : > { %397 = vst [vmem:[#allocation2 + $0x1b8] sm:$0xff] %v358_v43  ;;  %398 = vst [vmem:[#allocation2 + $0x1c0] sm:$0xff] %v356_v44  ;;  %v486_v43 = vsel %vm471_vm2, %v453_v63, %v455_v30  ;;  %v484_v44 = vsel %vm471_vm2, %v455_v30, %v457_v36  ;;  %v446_v55 = vrot.slane %v1650_v46, 1  ;;  %v448_v29 = vrot.slane %v1653_v47, 1 }
  0x78   : > { %399 = vst [vmem:[#allocation2 + $0x1c8] sm:$0xff] %v354_v48  ;;  %400 = vst [vmem:[#allocation2 + $0x1d0] sm:$0xff] %v352_v62  ;;  %v459_v48 = vrot.slane %v1591_v25, 1  ;;  %v440_v62 = vrot.slane %v1629_v38, 1  ;;  %v502_v56 = vsel %vm471_vm2, %v469_v57, %v439_v61  ;;  %v450_v63 = vrot.slane %v1663_v52, 1 }
  0x79   : > { %401 = vst [vmem:[#allocation2 + $0x1d8] sm:$0xff] %v350_v2  ;;  %402 = vst [vmem:[#allocation2 + $0x1e0] sm:$0xff] %v348_v12  ;;  %v478_v12 = vsel %vm471_vm2, %v461_v49, %v463_v50  ;;  %v452_v30 = vrot.slane %v1666_v53, 1  ;;  %v454_v61 = vrot.slane %v1677_v58, 1 }
  0x7a   : > { %403 = vst [vmem:[#allocation2 + $0x1e8] sm:$0xff] %v346_v13  ;;  %404 = vst [vmem:[#allocation2 + $0x1f0] sm:$0xff] %v344_v16  ;;  %v482_v2 = vsel %vm471_vm2, %v457_v36, %v459_v48  ;;  %v480_v5 = vsel %vm471_vm2, %v459_v48, %v461_v49  ;;  %v442_v13 = vrot.slane %v1635_v40, 1  ;;  %v476_v16 = vsel %vm471_vm2, %v463_v50, %v465_v51 }
  0x7b   : > { %405 = vst [vmem:[#allocation2 + $0x1f8] sm:$0xff] %v342_v23  ;;  %505 = vst [vmem:[#allocation2 + $0x300] sm:$0xff] %v500_v24  ;;  %v474_v23 = vsel %vm471_vm2, %v465_v51, %v467_v54  ;;  %v472_v24 = vsel %vm471_vm2, %v467_v54, %v469_v57  ;;  %v495_v36 = vsel %vm471_vm2, %v446_v55, %v448_v29  ;;  %v460_v49 = vrot.slane %v1699_v4, 1 }
  0x7c   : > { %506 = vst [vmem:[#allocation2 + $0x308] sm:$0xff] %v498_v21  ;;  %507 = vst [vmem:[#allocation2 + $0x310] sm:$0xff] %v496_v34  ;;  %v501_v27 = vsel %vm471_vm2, %v440_v62, %v442_v13  ;;  %v456_v21 = vrot.slane %v1680_v59, 1  ;;  %v499_v34 = vsel %vm471_vm2, %v442_v13, %v444_v28  ;;  %v462_v50 = vrot.slane %v1702_v6, 1 }
  0x7d   : > { %508 = vst [vmem:[#allocation2 + $0x318] sm:$0xff] %v494_v35  ;;  %509 = vst [vmem:[#allocation2 + $0x320] sm:$0xff] %v492_v37  ;;  %v497_v35 = vsel %vm471_vm2, %v444_v28, %v446_v55  ;;  %v458_v37 = vrot.slane %v1683_v60, 1  ;;  %v464_v51 = vrot.slane %v1705_v11, 1  ;;  %v466_v54 = vrot.slane %v1719_v17, 1 }
  0x7e   : > { %510 = vst [vmem:[#allocation2 + $0x328] sm:$0xff] %v490_v41  ;;  %511 = vst [vmem:[#allocation2 + $0x330] sm:$0xff] %v488_v42  ;;  %v493_v41 = vsel %vm471_vm2, %v448_v29, %v450_v63  ;;  %v491_v42 = vsel %vm471_vm2, %v450_v63, %v452_v30  ;;  %v468_v57 = vrot.slane %v1722_v22, 1  ;;  %v481_v13 = vsel %vm471_vm2, %v460_v49, %v462_v50 }
  0x7f   : > { %512 = vst [vmem:[#allocation2 + $0x338] sm:$0xff] %v486_v43  ;;  %513 = vst [vmem:[#allocation2 + $0x340] sm:$0xff] %v484_v44  ;;  %v489_v43 = vsel %vm471_vm2, %v452_v30, %v454_v61  ;;  %v487_v44 = vsel %vm471_vm2, %v454_v61, %v456_v21  ;;  %v485_v48 = vsel %vm471_vm2, %v456_v21, %v458_v37  ;;  %v543_v28 = vrot.slane %v1550_v8, 2 }
  0x80   : > { %514 = vst [vmem:[#allocation2 + $0x348] sm:$0xff] %v482_v2  ;;  %515 = vst [vmem:[#allocation2 + $0x350] sm:$0xff] %v480_v5  ;;  %v470_v2 = vrot.slane %v1632_v39, 1  ;;  %v537_v5 = vrot.slane %v1532_v0, 2  ;;  %v475_v0 = vsel %vm471_vm2, %v466_v54, %v468_v57  ;;  %v545_v55 = vrot.slane %v1553_v9, 2 }
  0x81   : > { %516 = vst [vmem:[#allocation2 + $0x358] sm:$0xff] %v478_v12  ;;  %517 = vst [vmem:[#allocation2 + $0x360] sm:$0xff] %v476_v16  ;;  %v483_v12 = vsel %vm471_vm2, %v458_v37, %v460_v49  ;;  %v479_v16 = vsel %vm471_vm2, %v462_v50, %v464_v51  ;;  %v547_v63 = vrot.slane %v1564_v14, 2  ;;  %v549_v30 = vrot.slane %v1567_v15, 2 }
  0x82   : > { %518 = vst [vmem:[#allocation2 + $0x368] sm:$0xff] %v474_v23  ;;  %519 = vst [vmem:[#allocation2 + $0x370] sm:$0xff] %v472_v24  ;;  %v539_v23 = vrot.slane %v1538_v3, 2  ;;  %v477_v24 = vsel %vm471_vm2, %v464_v51, %v466_v54  ;;  %v541_v3 = vrot.slane %v1547_v7, 2  ;;  %v592_v8 = vsel %vm569_vm3, %v543_v28, %v545_v55 }
  0x83   : > { %520 = vst [vmem:[#allocation2 + $0x378] sm:$0xff] %v502_v56  ;;  %521 = vst [vmem:[#allocation2 + $0x380] sm:$0xff] %v501_v27  ;;  %v473_v56 = vsel %vm471_vm2, %v468_v57, %v470_v2  ;;  %v503_v27 = vsel %vm471_vm2, %v470_v2, %v440_v62  ;;  %v551_v62 = vrot.slane %v1574_v18, 2  ;;  %v553_v9 = vrot.slane %v1577_v19, 2 }
  0x84   : > { %522 = vst [vmem:[#allocation2 + $0x388] sm:$0xff] %v499_v34  ;;  %523 = vst [vmem:[#allocation2 + $0x390] sm:$0xff] %v497_v35  ;;  %v598_v29 = vsel %vm569_vm3, %v537_v5, %v539_v23  ;;  %v596_v61 = vsel %vm569_vm3, %v539_v23, %v541_v3  ;;  %v594_v7 = vsel %vm569_vm3, %v541_v3, %v543_v28  ;;  %v555_v21 = vrot.slane %v1580_v20, 2 }
  0x85   : > { %524 = vst [vmem:[#allocation2 + $0x398] sm:$0xff] %v495_v36  ;;  %525 = vst [vmem:[#allocation2 + $0x3a0] sm:$0xff] %v493_v41  ;;  %v590_v14 = vsel %vm569_vm3, %v545_v55, %v547_v63  ;;  %v588_v15 = vsel %vm569_vm3, %v547_v63, %v549_v30  ;;  %v586_v18 = vsel %vm569_vm3, %v549_v30, %v551_v62  ;;  %v557_v34 = vrot.slane %v1591_v25, 2 }
  0x86   : > { %526 = vst [vmem:[#allocation2 + $0x3a8] sm:$0xff] %v491_v42  ;;  %527 = vst [vmem:[#allocation2 + $0x3b0] sm:$0xff] %v489_v43  ;;  %v584_v19 = vsel %vm569_vm3, %v551_v62, %v553_v9  ;;  %v559_v35 = vrot.slane %v1594_v26, 2  ;;  %v561_v36 = vrot.slane %v1609_v31, 2  ;;  %v582_v37 = vsel %vm569_vm3, %v553_v9, %v555_v21 }
  0x87   : > { %528 = vst [vmem:[#allocation2 + $0x3b8] sm:$0xff] %v487_v44  ;;  %529 = vst [vmem:[#allocation2 + $0x3c0] sm:$0xff] %v485_v48  ;;  %v563_v41 = vrot.slane %v1612_v32, 2  ;;  %v565_v20 = vrot.slane %v1615_v33, 2  ;;  %v567_v42 = vrot.slane %v1535_v1, 2  ;;  %v580_v43 = vsel %vm569_vm3, %v555_v21, %v557_v34 }
  0x88   : > { %530 = vst [vmem:[#allocation2 + $0x3c8] sm:$0xff] %v483_v12  ;;  %531 = vst [vmem:[#allocation2 + $0x3d0] sm:$0xff] %v481_v13  ;;  %v578_v25 = vsel %vm569_vm3, %v557_v34, %v559_v35  ;;  %v576_v26 = vsel %vm569_vm3, %v559_v35, %v561_v36  ;;  %v538_v31 = vrot.slane %v1629_v38, 2  ;;  %v540_v38 = vrot.slane %v1635_v40, 2 }
  0x89   : > { %532 = vst [vmem:[#allocation2 + $0x3d8] sm:$0xff] %v479_v16  ;;  %533 = vst [vmem:[#allocation2 + $0x3e0] sm:$0xff] %v477_v24  ;;  %v574_v32 = vsel %vm569_vm3, %v561_v36, %v563_v41  ;;  %v572_v1 = vsel %vm569_vm3, %v563_v41, %v565_v20  ;;  %v570_v33 = vsel %vm569_vm3, %v565_v20, %v567_v42  ;;  %v542_v48 = vrot.slane %v1647_v45, 2 }
  0x8a   : > { %534 = vst [vmem:[#allocation2 + $0x3e8] sm:$0xff] %v475_v0  ;;  %535 = vst [vmem:[#allocation2 + $0x3f0] sm:$0xff] %v473_v56  ;;  %v600_v44 = vsel %vm569_vm3, %v567_v42, %v537_v5  ;;  %v544_v49 = vrot.slane %v1650_v46, 2  ;;  %v546_v50 = vrot.slane %v1653_v47, 2  ;;  %v548_v51 = vrot.slane %v1663_v52, 2 }
  0x8b   : > { %536 = vst [vmem:[#allocation2 + $0x3f8] sm:$0xff] %v503_v27  ;;  %603 = vst [vmem:[#allocation2 + $0x400] sm:$0xff] %v598_v29  ;;  %v550_v54 = vrot.slane %v1666_v53, 2  ;;  %v552_v57 = vrot.slane %v1677_v58, 2  ;;  %v554_v2 = vrot.slane %v1680_v59, 2  ;;  %v599_v5 = vsel %vm569_vm3, %v538_v31, %v540_v38 }
  0x8c   : > { %604 = vst [vmem:[#allocation2 + $0x408] sm:$0xff] %v596_v61  ;;  %605 = vst [vmem:[#allocation2 + $0x410] sm:$0xff] %v594_v7  ;;  %v597_v40 = vsel %vm569_vm3, %v540_v38, %v542_v48  ;;  %v595_v45 = vsel %vm569_vm3, %v542_v48, %v544_v49  ;;  %v593_v46 = vsel %vm569_vm3, %v544_v49, %v546_v50  ;;  %v556_v59 = vrot.slane %v1683_v60, 2 }
  0x8d   : > { %606 = vst [vmem:[#allocation2 + $0x418] sm:$0xff] %v592_v8  ;;  %607 = vst [vmem:[#allocation2 + $0x420] sm:$0xff] %v590_v14  ;;  %v591_v47 = vsel %vm569_vm3, %v546_v50, %v548_v51  ;;  %v589_v52 = vsel %vm569_vm3, %v548_v51, %v550_v54  ;;  %v587_v53 = vsel %vm569_vm3, %v550_v54, %v552_v57  ;;  %v558_v12 = vrot.slane %v1699_v4, 2 }
  0x8e   : > { %608 = vst [vmem:[#allocation2 + $0x428] sm:$0xff] %v588_v15  ;;  %609 = vst [vmem:[#allocation2 + $0x430] sm:$0xff] %v586_v18  ;;  %v585_v58 = vsel %vm569_vm3, %v552_v57, %v554_v2  ;;  %v560_v13 = vrot.slane %v1702_v6, 2  ;;  %v562_v16 = vrot.slane %v1705_v11, 2  ;;  %v564_v23 = vrot.slane %v1719_v17, 2 }
  0x8f   : > { %610 = vst [vmem:[#allocation2 + $0x438] sm:$0xff] %v584_v19  ;;  %611 = vst [vmem:[#allocation2 + $0x440] sm:$0xff] %v582_v37  ;;  %v566_v24 = vrot.slane %v1722_v22, 2  ;;  %v568_v0 = vrot.slane %v1632_v39, 2  ;;  %v583_v56 = vsel %vm569_vm3, %v554_v2, %v556_v59  ;;  %v581_v27 = vsel %vm569_vm3, %v556_v59, %v558_v12 }
  0x90   : > { %612 = vst [vmem:[#allocation2 + $0x448] sm:$0xff] %v580_v43  ;;  %613 = vst [vmem:[#allocation2 + $0x450] sm:$0xff] %v578_v25  ;;  %v579_v60 = vsel %vm569_vm3, %v558_v12, %v560_v13  ;;  %v577_v4 = vsel %vm569_vm3, %v560_v13, %v562_v16  ;;  %v575_v39 = vsel %vm569_vm3, %v562_v16, %v564_v23 }
  0x91   : > { %614 = vst [vmem:[#allocation2 + $0x458] sm:$0xff] %v576_v26  ;;  %615 = vst [vmem:[#allocation2 + $0x460] sm:$0xff] %v574_v32  ;;  %v573_v6 = vsel %vm569_vm3, %v564_v23, %v566_v24  ;;  %v571_v11 = vsel %vm569_vm3, %v566_v24, %v568_v0  ;;  %v601_v17 = vsel %vm569_vm3, %v568_v0, %v538_v31 }
  0x92   : > { %616 = vst [vmem:[#allocation2 + $0x468] sm:$0xff] %v572_v1  ;;  %617 = vst [vmem:[#allocation2 + $0x470] sm:$0xff] %v570_v33 }
  0x93   : > { %618 = vst [vmem:[#allocation2 + $0x478] sm:$0xff] %v600_v44  ;;  %619 = vst [vmem:[#allocation2 + $0x480] sm:$0xff] %v599_v5 }
  0x94   : > { %620 = vst [vmem:[#allocation2 + $0x488] sm:$0xff] %v597_v40  ;;  %621 = vst [vmem:[#allocation2 + $0x490] sm:$0xff] %v595_v45 }
  0x95   : > { %622 = vst [vmem:[#allocation2 + $0x498] sm:$0xff] %v593_v46  ;;  %623 = vst [vmem:[#allocation2 + $0x4a0] sm:$0xff] %v591_v47 }
  0x96   : > { %624 = vst [vmem:[#allocation2 + $0x4a8] sm:$0xff] %v589_v52  ;;  %625 = vst [vmem:[#allocation2 + $0x4b0] sm:$0xff] %v587_v53 }
  0x97   : > { %626 = vst [vmem:[#allocation2 + $0x4b8] sm:$0xff] %v585_v58  ;;  %627 = vst [vmem:[#allocation2 + $0x4c0] sm:$0xff] %v583_v56 }
  0x98   : > { %628 = vst [vmem:[#allocation2 + $0x4c8] sm:$0xff] %v581_v27  ;;  %629 = vst [vmem:[#allocation2 + $0x4d0] sm:$0xff] %v579_v60 }
  0x99   : > { %630 = vst [vmem:[#allocation2 + $0x4d8] sm:$0xff] %v577_v4  ;;  %631 = vst [vmem:[#allocation2 + $0x4e0] sm:$0xff] %v575_v39 }
  0x9a   : > { %632 = vst [vmem:[#allocation2 + $0x4e8] sm:$0xff] %v573_v6  ;;  %633 = vst [vmem:[#allocation2 + $0x4f0] sm:$0xff] %v571_v11 }
  0x9b   : > { %634 = vst [vmem:[#allocation2 + $0x4f8] sm:$0xff] %v601_v17 }
  0x9c LB: >> { %s642_s19 = sld [smem:[#allocation3]]  ;;  %s1112_s29 = sld [smem:[#allocation3 + $0x5]]  ;;  %s1360_s23 = sphi %s2065_s23, %s640_s23  }
  0x9d   : >> { %s1111_s30 = sshll.u32 %s1360_s23, 4  ;;  %s1118_s4 = sld [smem:[#allocation3 + $0xa]] }
  0x9e   : >> { %s1124_s5 = sld [smem:[#allocation3 + $0xf]]  ;;  %s2073_s6 = scalar_lea.vmem [#allocation2], %s1111_s30 }
  0x9f   : >> { %s2078_s7 = sld [smem:[#allocation3 + $0x14]]  ;;  %s2106_s24 = sld [smem:[#allocation3 + $0x1]] }
  0xa0   : >> { %s2108_s27 = sld [smem:[#allocation3 + $0x6]]  ;;  %s2122_s8 = sld [smem:[#allocation3 + $0xb]] }
  0xa1   : >> { %s2136_s14 = sld [smem:[#allocation3 + $0x10]]  ;;  %s2149_s16 = sld [smem:[#allocation3 + $0x15]] }
  0xa2   : >> { %v2076_v10 = vld [vmem:[%s2073_s6 + $0x80] sm:$0xff]  ;;  %v648_v55 = vstv %s642_s19  ;;  %v664_v61 = vstv %s1112_s29  ;;  %v2101_v8 = vld [vmem:[%s2073_s6 + $0x88] sm:$0xff]  ;;  %s2174_s17 = sld [smem:[#allocation3 + $0x3]]  ;;  %s1366_s3 = smov 2  }
  0xa3   : >> { %v2081_v22 = vld [vmem:[%s2073_s6 + $0x180] sm:$0xff]  ;;  %v651_v62 = vmul.f32 %v648_v55, %v2076_v10  ;;  %v2104_v9 = vld [vmem:[%s2073_s6 + $0x188] sm:$0xff]  ;;  %v680_v15 = vstv %s1118_s4  ;;  %v652_v35 = vmul.f32 %v648_v55, %v2101_v8  ;;  %s2179_s25 = sld [smem:[#allocation3 + $0x8]]  ;;  %s2181_s26 = sld [smem:[#allocation3 + $0xd]] }
  0xa4   : >> { %v2084_v3 = vld [vmem:[%s2073_s6 + $0x280] sm:$0xff]  ;;  %v667_v14 = vmul.f32 %v2081_v22, %v664_v61  ;;  %v696_v37 = vstv %s1124_s5  ;;  %v668_v20 = vmul.f32 %v2104_v9, %v664_v61  ;;  %v2128_v42 = vld [vmem:[%s2073_s6 + $0x288] sm:$0xff]  ;;  %s2189_s19 = sld [smem:[#allocation3 + $0x12]]  ;;  %s2191_s29 = sld [smem:[#allocation3 + $0x17]] }
  0xa5   : >> { %v2087_v28 = vld [vmem:[%s2073_s6] sm:$0xff]  ;;  %v683_v36 = vmul.f32 %v2084_v3, %v680_v15  ;;  %v2131_v43 = vld [vmem:[%s2073_s6 + $0x388] sm:$0xff]  ;;  %v712_v32 = vstv %s2078_s7  ;;  %v684_v5 = vmul.f32 %v2128_v42, %v680_v15  ;;  %v734_v24 = vstv %s2106_s24  ;;  %s1367_s4 = smov 1   ;;  %s2210_s5 = sld [smem:[#allocation3 + $0x4]] }
  0xa6   : >> { %v2090_v29 = vld [vmem:[%s2073_s6 + $0x380] sm:$0xff]  ;;  %v649_v7 = vmul.f32 %v648_v55, %v2087_v28  ;;  %v2134_v25 = vld [vmem:[%s2073_s6 + $0x488] sm:$0xff]  ;;  %v671_v26 = vadd.f32 %v667_v14, %v651_v62  ;;  %v672_v51 = vadd.f32 %v668_v20, %v652_v35  ;;  %v700_v40 = vmul.f32 %v2131_v43, %v696_v37  ;;  %s2218_s7 = sld [smem:[#allocation3 + $0xe]]  ;;  %s2220_s24 = sld [smem:[#allocation3 + $0x13]] }
  0xa7   : >> { %v2093_v63 = vld [vmem:[%s2073_s6 + $0x100] sm:$0xff]  ;;  %v699_v31 = vmul.f32 %v2090_v29, %v696_v37  ;;  %v2141_v33 = vld [vmem:[%s2073_s6 + $0x8] sm:$0xff]  ;;  %v716_v46 = vmul.f32 %v2134_v25, %v712_v32  ;;  %v744_v0 = vstv %s2108_s27  ;;  %v754_v11 = vstv %s2122_s8  ;;  %s2230_s27 = sld [smem:[#allocation3 + $0x18]]  ;;  %s1368_s8 = smov 127  }
  0xa8   : >> { %v2096_v30 = vld [vmem:[%s2073_s6 + $0x200] sm:$0xff]  ;;  %v665_v21 = vmul.f32 %v2093_v63, %v664_v61  ;;  %v2144_v44 = vld [vmem:[%s2073_s6 + $0x108] sm:$0xff]  ;;  %v687_v57 = vadd.f32 %v683_v36, %v671_v26  ;;  %v650_v47 = vmul.f32 %v648_v55, %v2141_v33  ;;  %v688_v12 = vadd.f32 %v684_v5, %v672_v51  ;;  %s640_s23 = sadd.s32 1, %s1360_s23  }
  0xa9   : >> { %v2112_v18 = vld [vmem:[%s2073_s6 + $0x480] sm:$0xff]  ;;  %v681_v41 = vmul.f32 %v2096_v30, %v680_v15  ;;  %v2147_v38 = vld [vmem:[%s2073_s6 + $0x208] sm:$0xff]  ;;  %v666_v52 = vmul.f32 %v2144_v44, %v664_v61  ;;  %v736_v4 = vmul.f32 %v734_v24, %v2141_v33  ;;  %v746_v6 = vmul.f32 %v2144_v44, %v744_v0  ;;  %p637_p12 = scmp.ge.s32.totalorder %s640_s23, 8  }
  0xaa   : >> { %v2116_v19 = vld [vmem:[%s2073_s6 + $0x300] sm:$0xff]  ;;  %v669_v1 = vadd.f32 %v665_v21, %v649_v7  ;;  %v715_v48 = vmul.f32 %v2112_v18, %v712_v32  ;;  %v2155_v54 = vld [vmem:[%s2073_s6 + $0x308] sm:$0xff]  ;;  %v682_v53 = vmul.f32 %v2147_v38, %v680_v15  ;;  %v703_v58 = vadd.f32 %v699_v31, %v687_v57  ;;  %p2381_p0 = scmp.ne.s32.totalorder (%p637_p12), %s2374_s21, 0  ;;  %s1370_s23 = smov (%p637_p12), [#allocation8]  }
  0xab   : >> { %v2119_v34 = vld [vmem:[%s2073_s6 + $0x400] sm:$0xff]  ;;  %v697_v49 = vmul.f32 %v2116_v19, %v696_v37  ;;  %v2160_v45 = vld [vmem:[%s2073_s6 + $0x408] sm:$0xff]  ;;  %v698_v13 = vmul.f32 %v2155_v54, %v696_v37  ;;  %v670_v16 = vadd.f32 %v666_v52, %v650_v47  ;;  %v704_v60 = vadd.f32 %v700_v40, %v688_v12  ;;  %s2215_s6 = sld [smem:[#allocation3 + $0x9]] }
  0xac   : >> { %v713_v50 = vmul.f32 %v2119_v34, %v712_v32  ;;  %v685_v2 = vadd.f32 %v681_v41, %v669_v1  ;;  %v714_v23 = vmul.f32 %v2160_v45, %v712_v32  ;;  %v719_v56 = vadd.f32 %v715_v48, %v703_v58 }
  0xad   : >> { %v686_v39 = vadd.f32 %v682_v53, %v670_v16  ;;  %v764_v17 = vstv %s2136_s14  ;;  %v720_v55 = vadd.f32 %v716_v46, %v704_v60  ;;  %v756_v62 = vmul.f32 %v2147_v38, %v754_v11  ;;  %s2249_s14 = sld [smem:[#allocation3 + $0x2]] }
  0xae   : >> { %v701_v59 = vadd.f32 %v697_v49, %v685_v2  ;;  %725 = vrot.lane.b32.xlu1 %v719_v56, %s1366_s3  ;;  %v766_v61 = vmul.f32 %v2155_v54, %v764_v17  ;;  %v774_v7 = vstv %s2149_s16  ;;  %v750_v15 = vadd.f32 %v746_v6, %v736_v4  ;;  %s2253_s16 = sld [smem:[#allocation3 + $0x7]] }
  0xaf   : >> { %v702_v14 = vadd.f32 %v698_v13, %v686_v39  ;;  %v776_v21 = vmul.f32 %v2160_v45, %v774_v7  ;;  %v735_v35 = vmul.f32 %v734_v24, %v2087_v28  ;;  %v745_v36 = vmul.f32 %v2093_v63, %v744_v0 }
  0xb0   : >> { %v717_v27 = vadd.f32 %v713_v50, %v701_v59  ;;  %v755_v37 = vmul.f32 %v2096_v30, %v754_v11  ;;  %v765_v41 = vmul.f32 %v2116_v19, %v764_v17  ;;  %v775_v20 = vmul.f32 %v2119_v34, %v774_v7 }
  0xb1   : >> { %v718_v26 = vadd.f32 %v714_v23, %v702_v14  ;;  %v760_v31 = vadd.f32 %v756_v62, %v750_v15  ;;  %v738_v32 = vmul.f32 %v734_v24, %v2101_v8  ;;  %v748_v1 = vmul.f32 %v2104_v9, %v744_v0 }
  0xb2   : >> { %721 = vrot.lane.b32.xlu0 %v717_v27, %s1366_s3  ;;  %727 = vrot.lane.b32.xlu1 %v720_v55, %s1366_s3  ;;  %v749_v48 = vadd.f32 %v745_v36, %v735_v35  ;;  %v758_v49 = vmul.f32 %v2128_v42, %v754_v11  ;;  %v768_v50 = vmul.f32 %v2131_v43, %v764_v17  ;;  %v850_v13 = vstv %s2174_s17  ;;  %s2257_s17 = sld [smem:[#allocation3 + $0xc]] }
  0xb3   : >> { %v778_v51 = vmul.f32 %v2134_v25, %v774_v7  ;;  %v770_v57 = vadd.f32 %v766_v61, %v760_v31  ;;  %v752_v2 = vadd.f32 %v748_v1, %v738_v32  ;;  %v737_v5 = vmul.f32 %v734_v24, %v2076_v10 }
  0xb4   : >> { %v747_v40 = vmul.f32 %v2081_v22, %v744_v0  ;;  %v759_v46 = vadd.f32 %v755_v37, %v749_v48  ;;  %v757_v47 = vmul.f32 %v2084_v3, %v754_v11  ;;  %v767_v52 = vmul.f32 %v2090_v29, %v764_v17 }
  0xb5   : >> { %v777_v53 = vmul.f32 %v2112_v18, %v774_v7  ;;  %v780_v58 = vadd.f32 %v776_v21, %v770_v57  ;;  %v762_v59 = vadd.f32 %v758_v49, %v752_v2  ;;  %v852_v23 = vmul.f32 %v850_v13, %v2141_v33 }
  0xb6   : >> { %723 = vrot.lane.b32.xlu0 %v718_v26, %s1366_s3  ;;  %v751_v12 = vadd.f32 %v747_v40, %v737_v5  ;;  %v769_v16 = vadd.f32 %v765_v41, %v759_v46  ;;  %v860_v56 = vstv %s2179_s25  ;;  %v870_v24 = vstv %s2181_s26  ;;  %s2259_s3 = sld [smem:[#allocation3 + $0x11]]  ;;  %s2267_s25 = sld [smem:[#allocation3 + $0x16]] }
  0xb7   : >> { %785 = vrot.lane.b32.xlu1 %v780_v58, %s1367_s4  ;;  %v772_v0 = vadd.f32 %v768_v50, %v762_v59  ;;  %v862_v60 = vmul.f32 %v2144_v44, %v860_v56  ;;  %v872_v4 = vmul.f32 %v2147_v38, %v870_v24  ;;  %v880_v6 = vstv %s2189_s19  ;;  %s1369_s26 = smov 126   ;;  %s973_s19 = scalar_lea.vmem %s2063_s20, %s1111_s30 [#allocation8] }
  0xb8   : >> { %v761_v27 = vadd.f32 %v757_v47, %v751_v12  ;;  %v779_v39 = vadd.f32 %v775_v20, %v769_v16  ;;  %v890_v11 = vstv %s2191_s29  ;;  %v851_v17 = vmul.f32 %v850_v13, %v2087_v28  ;;  %s1165_s30 = sshll.u32 (%p637_p12), %s1409_s13, 12 }
  0xb9   : >> { %v782_v55 = vadd.f32 %v778_v51, %v772_v0  ;;  %v866_v61 = vadd.f32 %v862_v60, %v852_v23  ;;  %v882_v7 = vmul.f32 %v2155_v54, %v880_v6  ;;  %v892_v14 = vmul.f32 %v2160_v45, %v890_v11 }
  0xba   : >> { %v771_v62 = vadd.f32 %v767_v52, %v761_v27  ;;  %783 = vrot.lane.b32.xlu0 %v779_v39, %s1367_s4  ;;  %v861_v15 = vmul.f32 %v2093_v63, %v860_v56  ;;  %v871_v21 = vmul.f32 %v2096_v30, %v870_v24  ;;  %v881_v35 = vmul.f32 %v2116_v19, %v880_v6 }
  0xbb   : >> { %789 = vrot.lane.b32.xlu1 %v782_v55, %s1367_s4  ;;  %v876_v37 = vadd.f32 %v872_v4, %v866_v61  ;;  %v891_v41 = vmul.f32 %v2119_v34, %v890_v11  ;;  %v854_v20 = vmul.f32 %v850_v13, %v2101_v8  ;;  %v864_v31 = vmul.f32 %v2104_v9, %v860_v56 }
  0xbc   : >> { %v781_v36 = vadd.f32 %v777_v53, %v771_v62  ;;  %v865_v26 = vadd.f32 %v861_v15, %v851_v17  ;;  %v874_v32 = vmul.f32 %v2128_v42, %v870_v24  ;;  %v884_v1 = vmul.f32 %v2131_v43, %v880_v6 }
  0xbd   : >> { %v886_v48 = vadd.f32 %v882_v7, %v876_v37  ;;  %v894_v49 = vmul.f32 %v2134_v25, %v890_v11  ;;  %v853_v50 = vmul.f32 %v850_v13, %v2076_v10  ;;  %v863_v51 = vmul.f32 %v2081_v22, %v860_v56 }
  0xbe   : >> { %787 = vrot.lane.b32.xlu0 %v781_v36, %s1367_s4  ;;  %v875_v57 = vadd.f32 %v871_v21, %v865_v26  ;;  %v868_v2 = vadd.f32 %v864_v31, %v854_v20  ;;  %v873_v5 = vmul.f32 %v2084_v3, %v870_v24  ;;  %v883_v40 = vmul.f32 %v2090_v29, %v880_v6 }
  0xbf   : >> { %v896_v46 = vadd.f32 %v892_v14, %v886_v48  ;;  %v867_v47 = vadd.f32 %v863_v51, %v853_v50  ;;  %v893_v52 = vmul.f32 %v2112_v18, %v890_v11  ;;  %v912_v53 = vstv %s2210_s5  ;;  %s2320_s5 = scalar_lea.hbm (%p637_p12), %s2368_s2, %s1165_s30 }
  0xc0   : >> { %v885_v58 = vadd.f32 %v881_v35, %v875_v57  ;;  %v878_v59 = vadd.f32 %v874_v32, %v868_v2  ;;  %v914_v12 = vmul.f32 %v912_v53, %v2141_v33  ;;  %v922_v13 = vstv %s2215_s6  ;;  %s993_s6 = sshll.u32 (%p637_p12), %s2063_s20, 4  ;;  %s2323_s6 = int_to_ptr.vmem [resolvable:$true] %s993_s6 }
  0xc1   : >> { %901 = vrot.lane.b32.xlu1 %v896_v46, %s1368_s8  ;;  %v877_v16 = vadd.f32 %v873_v5, %v867_v47  ;;  %v924_v23 = vmul.f32 %v2144_v44, %v922_v13  ;;  %v932_v56 = vstv %s2218_s7  ;;  %v942_v24 = vstv %s2220_s24  ;;  %s979_s7 = scalar_lea.sflag (%p637_p12), [#allocation5], %s1519_s28  ;;  %s1282_s24 = scalar_lea.vmem (%p637_p12), %s2323_s6, 4096 }
  0xc2   : >> { %v895_v0 = vadd.f32 %v891_v41, %v885_v58  ;;  %v888_v27 = vadd.f32 %v884_v1, %v878_v59  ;;  %v934_v60 = vmul.f32 %v2147_v38, %v932_v56  ;;  %v944_v4 = vmul.f32 %v2155_v54, %v942_v24  ;;  %p1283_p13 = scmp.ne.s32.totalorder (%p637_p12), %s2323_s6, %s1282_s24 }
  0xc3   : >> { %v887_v39 = vadd.f32 %v883_v40, %v877_v16  ;;  %v928_v6 = vadd.f32 %v924_v23, %v914_v12  ;;  %v952_v11 = vstv %s2230_s27  ;;  %v913_v17 = vmul.f32 %v912_v53, %v2087_v28  ;;  %s1286_s27 = sshll.u32 (%p637_p12), %s1370_s23, 4  ;;  %s1287_s27 = int_to_ptr.vmem [resolvable:$false] %s1286_s27 }
  0xc4   : >> { %899 = vrot.lane.b32.xlu0 %v895_v0, %s1368_s8  ;;  %v898_v55 = vadd.f32 %v894_v49, %v888_v27  ;;  %v954_v62 = vmul.f32 %v2160_v45, %v952_v11  ;;  %v923_v61 = vmul.f32 %v2093_v63, %v922_v13  ;;  %v933_v7 = vmul.f32 %v2096_v30, %v932_v56  ;;  %p1284_p3 = pnand (%p637_p12), %p1283_p13, %p2381_p0  ;;  %s1288_s13 = scalar_lea.vmem (%p637_p12), %s1287_s27, 8192 }
  0xc5   : >> { %v897_v14 = vadd.f32 %v893_v52, %v887_v39  ;;  %v938_v15 = vadd.f32 %v934_v60, %v928_v6  ;;  %v943_v21 = vmul.f32 %v2116_v19, %v942_v24  ;;  %v953_v35 = vmul.f32 %v2119_v34, %v952_v11  ;;  %p1289_p5 = scmp.lt.s32.totalorder (%p637_p12), %s2323_s6, %s1287_s27  ;;  %p1290_p1 = scmp.lt.s32.totalorder (%p637_p12), %s1288_s13, %s1282_s24 }
  0xc6   : >> { %905 = vrot.lane.b32.xlu1 %v898_v55, %s1368_s8  ;;  %v927_v36 = vadd.f32 %v923_v61, %v913_v17  ;;  %v916_v37 = vmul.f32 %v912_v53, %v2101_v8  ;;  %v926_v41 = vmul.f32 %v2104_v9, %v922_v13  ;;  %v936_v20 = vmul.f32 %v2128_v42, %v932_v56  ;;  %p1285_p10 = pneg (%p637_p12), %p1284_p3 }
  0xc7   : >> { %v948_v26 = vadd.f32 %v944_v4, %v938_v15  ;;  %v946_v31 = vmul.f32 %v2131_v43, %v942_v24  ;;  %v956_v32 = vmul.f32 %v2134_v25, %v952_v11  ;;  %v915_v1 = vmul.f32 %v912_v53, %v2076_v10  ;;  %p1291_p6 = por (%p637_p12), %p1290_p1, %p1289_p5 }
  0xc8   : >> { %903 = vrot.lane.b32.xlu0 %v897_v14, %s1368_s8  ;;  %v937_v48 = vadd.f32 %v933_v7, %v927_v36  ;;  %v930_v49 = vadd.f32 %v926_v41, %v916_v37  ;;  %v925_v50 = vmul.f32 %v2081_v22, %v922_v13  ;;  %v935_v51 = vmul.f32 %v2084_v3, %v932_v56 }
  0xc9   : >> { %v958_v57 = vadd.f32 %v954_v62, %v948_v26  ;;  %v945_v2 = vmul.f32 %v2090_v29, %v942_v24  ;;  %v955_v5 = vmul.f32 %v2112_v18, %v952_v11  ;;  %v796_v40 = vstv %s2249_s14  ;;  %p1292_p7 = pnand (%p637_p12), %p1291_p6, %p1285_p10 }
  0xca   : >> { %v947_v46 = vadd.f32 %v943_v21, %v937_v48  ;;  %v940_v47 = vadd.f32 %v936_v20, %v930_v49  ;;  %v929_v52 = vadd.f32 %v925_v50, %v915_v1  ;;  %v798_v53 = vmul.f32 %v796_v40, %v2141_v33 }
  0xcb   : >> { %963 = vrot.lane.b32.xlu1 %v958_v57, %s1369_s26  ;;  %v806_v58 = vstv %s2253_s16  ;;  %v816_v59 = vstv %s2257_s17  ;;  %v826_v12 = vstv %s2259_s3  ;;  %v797_v13 = vmul.f32 %v796_v40, %v2087_v28 }
  0xcc   : >> { %v957_v16 = vadd.f32 %v953_v35, %v947_v46  ;;  %v950_v23 = vadd.f32 %v946_v31, %v940_v47  ;;  %v939_v56 = vadd.f32 %v935_v51, %v929_v52  ;;  %v808_v24 = vmul.f32 %v2144_v44, %v806_v58 }
  0xcd   : >> { %v818_v0 = vmul.f32 %v2147_v38, %v816_v59  ;;  %v836_v27 = vstv %s2267_s25  ;;  %v807_v60 = vmul.f32 %v2093_v63, %v806_v58  ;;  %v828_v6 = vmul.f32 %v2155_v54, %v826_v12 }
  0xce   : >> { %961 = vrot.lane.b32.xlu0 %v957_v16, %s1369_s26  ;;  %v960_v33 = vadd.f32 %v956_v32, %v950_v23  ;;  %v949_v4 = vadd.f32 %v945_v2, %v939_v56  ;;  %v812_v39 = vadd.f32 %v808_v24, %v798_v53  ;;  %v838_v11 = vmul.f32 %v2160_v45, %v836_v27 }
  0xcf   : >> { %v811_v28 = vadd.f32 %v807_v60, %v797_v13  ;;  %v817_v17 = vmul.f32 %v2096_v30, %v816_v59  ;;  %v827_v55 = vmul.f32 %v2116_v19, %v826_v12  ;;  %v800_v63 = vmul.f32 %v796_v40, %v2101_v8 }
  0xd0   : >> { %967 = vrot.lane.b32.xlu1 %v960_v33, %s1369_s26  ;;  %v959_v44 = vadd.f32 %v955_v5, %v949_v4  ;;  %v822_v38 = vadd.f32 %v818_v0, %v812_v39  ;;  %v810_v62 = vmul.f32 %v2104_v9, %v806_v58  ;;  %v837_v7 = vmul.f32 %v2119_v34, %v836_v27 }
  0xd1   : >> { %v821_v61 = vadd.f32 %v817_v17, %v811_v28  ;;  %v820_v54 = vmul.f32 %v2128_v42, %v816_v59  ;;  %v830_v45 = vmul.f32 %v2131_v43, %v826_v12  ;;  %v799_v19 = vmul.f32 %v796_v40, %v2076_v10 }
  0xd2   : >> { %965 = vrot.lane.b32.xlu0 %v959_v44, %s1369_s26  ;;  %v832_v30 = vadd.f32 %v828_v6, %v822_v38  ;;  %v814_v14 = vadd.f32 %v810_v62, %v800_v63  ;;  %v809_v15 = vmul.f32 %v2081_v22, %v806_v58  ;;  %v840_v8 = vmul.f32 %v2134_v25, %v836_v27 }
  0xd3   : >> { %v831_v21 = vadd.f32 %v827_v55, %v821_v61  ;;  %v819_v9 = vmul.f32 %v2084_v3, %v816_v59  ;;  %v829_v42 = vmul.f32 %v2090_v29, %v826_v12  ;;  %v839_v20 = vmul.f32 %v2112_v18, %v836_v27 }
  0xd4   : >> { %v842_v35 = vadd.f32 %v838_v11, %v832_v30  ;;  %v824_v36 = vadd.f32 %v820_v54, %v814_v14  ;;  %v813_v34 = vadd.f32 %v809_v15, %v799_v19 }
  0xd5   : >> { %v841_v37 = vadd.f32 %v837_v7, %v831_v21 }
  0xd6   : >> { %v834_v43 = vadd.f32 %v830_v45, %v824_v36  ;;  %v823_v41 = vadd.f32 %v819_v9, %v813_v34 }
  0xd8   : >> { %v844_v26 = vadd.f32 %v840_v8, %v834_v43  ;;  %v833_v31 = vadd.f32 %v829_v42, %v823_v41 }
  0xda   : >> { %v843_v10 = vadd.f32 %v839_v20, %v833_v31 }
 0x120   : >> { %v726_v32 = vpop.permute.xlu1 %725 }
 0x124   : >> { %v722_v22 = vpop.permute.xlu0 %721  ;;  %v728_v1 = vpop.permute.xlu1 %727 }
 0x128   : >> { %v724_v48 = vpop.permute.xlu0 %723 }
 0x129   : >> { %v786_v3 = vpop.permute.xlu1 %785 }
 0x12a   : >> { %v792_v29 = vadd.f32 %v786_v3, %v724_v48 }
 0x12c   : >> { %v784_v25 = vpop.permute.xlu0 %783  ;;  %v846_v40 = vadd.f32 %v842_v35, %v792_v29 }
 0x12d   : >> { %v790_v49 = vpop.permute.xlu1 %789  ;;  %v791_v5 = vadd.f32 %v784_v25, %v722_v22 }
 0x12e   : >> { %v794_v46 = vadd.f32 %v790_v49, %v728_v1 }
 0x12f   : >> { %v845_v53 = vadd.f32 %v841_v37, %v791_v5 }
 0x130   : >> { %v788_v50 = vpop.permute.xlu0 %787  ;;  %v848_v13 = vadd.f32 %v844_v26, %v794_v46 }
 0x131   : >> { %v793_v52 = vadd.f32 %v788_v50, %v726_v32 }
 0x133   : >> { %v902_v51 = vpop.permute.xlu1 %901  ;;  %v847_v56 = vadd.f32 %v843_v10, %v793_v52 }
 0x134   : >> { %v908_v47 = vadd.f32 %v902_v51, %v846_v40 }
 0x136   : >> { %v900_v57 = vpop.permute.xlu0 %899 }
 0x137   : >> { %v907_v12 = vadd.f32 %v900_v57, %v845_v53 }
 0x138   : >> { %v906_v2 = vpop.permute.xlu1 %905 }
 0x139   : >> { %v910_v23 = vadd.f32 %v906_v2, %v848_v13 }
 0x13a   : >> { %v904_v18 = vpop.permute.xlu0 %903 }
 0x13b   : >> { %v909_v27 = vadd.f32 %v904_v18, %v847_v56 }
 0x13d   : >> { %v964_v58 = vpop.permute.xlu1 %963 }
 0x13e   : >> { %v970_v59 = vadd.f32 %v964_v58, %v908_v47 }
 0x140   : >> { %975 = vst [vmem:[%s973_s19 + $0x8] sm:$0xff] %v970_v59  ;;  %v962_v16 = vpop.permute.xlu0 %961 }
 0x141   : >> { %v969_v24 = vadd.f32 %v962_v16, %v907_v12  ;;  %639 = sbr.rel (!%p637_p12) target bundleno = 156 (0x9c), region = 95 }
 0x142   : >> { %v968_v0 = vpop.permute.xlu1 %967 }
 0x143   : >> { %974 = vst [vmem:[%s973_s19] sm:$0xff] %v969_v24  ;;  %v972_v60 = vadd.f32 %v968_v0, %v910_v23 }
 0x144   : >> { %v966_v33 = vpop.permute.xlu0 %965 }
 0x145   : >> { %977 = vst [vmem:[%s973_s19 + $0x88] sm:$0xff] %v972_v60  ;;  %v971_v4 = vadd.f32 %v966_v33, %v909_v27 }
 0x147   : >> { %976 = vst [vmem:[%s973_s19 + $0x80] sm:$0xff] %v971_v4 }
 0x148   : > { %1295 = shalt.err (!%p1292_p7)
}
 0x149   : > { %s1296_s20 = scalar_lea.hbm %s2320_s5, 4096  ;;  %s1300_s16 = scalar_lea.hbm %s2368_s2, 12288 }
 0x14a   : > { %p1297_p8 = scmp.ne.s32.totalorder %s2320_s5, %s1296_s20  ;;  %p1301_p2 = scmp.lt.u32.totalorder %s2320_s5, %s2368_s2 }
 0x14b   : > { %p1302_p11 = scmp.lt.u32.totalorder %s1300_s16, %s1296_s20  ;;  %p1304_p13 = scmp.lt.u32.totalorder %s1296_s20, %s2320_s5 }
 0x14c   : > { %p1298_p9 = pnand %p1297_p8, %p2381_p0 }
 0x14d   : > { %p1303_p12 = por %p1302_p11, %p1301_p2 }
 0x14e   : > { %p1299_p4 = pneg %p1298_p9 }
 0x14f   : > { %p1305_p3 = por %p1304_p13, %p1303_p12 }
 0x151   : > { %p1306_p10 = pnand %p1305_p3, %p1299_p4 }
 0x153   : > { %1309 = shalt.err (!%p1306_p10)
}
 0x154   : > { %s1371_s25 = smov 128   ;;  %s1372_s26 = smov 8  }
 0x155   : > { %1172 = dma.vmem_to_hbm [thread:$0]  (%p2381_p0), %s2323_s6, 4096, %s2320_s5, %s979_s7, %s1371_s25, %s1371_s25, %s1372_s26  }
 0x156 PF: > { %p1189_p5 = scmp.ge.s32.totalorder %s1356_s12, 2  ;;  %s1008_s19 = sand.u32 1, %s1344_s9  }
 0x157   : > { %p2382_p1 = scmp.ne.s32.totalorder %s2375_s22, 0  ;;  %s1009_s30 = scalar_lea.sflag [#allocation5], %s1008_s19 }
 0x159   : > { %p1183_p6 = pnand %p1189_p5, %p2382_p1 }
 0x15b   : > { %1339 = dma.done.wait (!%p1183_p6), %s1009_s30, 4096  }
 0x15c   : > { %1341 = vsyncadd (!%p1183_p6), %s1009_s30, 4294963200  ;;  %p16_p7 = scmp.ge.s32.totalorder %s1413_s15, 5   ;;  %s2383_s9 = smov %s1348_s10 }
 0x15d   : > { %s2384_s10 = smov %s1352_s11  ;;  %s2385_s11 = smov %s1425_s18 }
 0x15e   : > { %s2386_s12 = smov %s1413_s15  ;;  %18 = sbr.rel (!%p16_p7) target bundleno = 6 (0x6), region = 106 }
 0x165   :  { %1014 = vsyncpa [#allocation4], 1 }
 0x166   :  { %1016 = vsyncpa [#allocation4 + $0x1], 1 }
 0x167   :  { %1017 = vsyncpa [#allocation5], 1 }
 0x168   :  { %1019 = vsyncpa [#allocation5 + $0x1], 1 }
 0x169   :  { %1020 = vsyncpa [#allocation6], 1 }
 0x16a   :  { %1022 = vsyncpa [#allocation6 + $0x1], 1 }

</bundles_post_ra>
